<compile_context>
chip_gen: v6e
topology: v6e:2x2x1
jax: 0.10.0
libtpu: 0.0.40
codegen_flags: <defaults>
</compile_context>

<pallas_src>
import functools

import numpy as np
import jax
import jax.numpy as jnp
from jax.experimental import pallas as pl
from jax.experimental.pallas import tpu as pltpu


def _round_up(a, b):
    return ((a + b - 1) // b) * b


# ---------------------------------------------------------------------------
# Pallas kernel: hermitian flip + positional encoding + ResidLinearMLP + fused
# r0 -/+ r1 combine.  All tensors are in "transposed" layout: (channels, rows).
# ---------------------------------------------------------------------------
def _decoder_kernel(x_ref, freqs_ref, w1_ref, b1_ref, wres_ref, bres_ref,
                    wout_ref, bout_ref, o_ref, *, enc_dim, nlayers):
    x = x_ref[...]                                    # (C_pad, tm) f32
    # hermitian half-space flip: where z > 0, negate coords and (later) r1
    sgn = jnp.where(x[2:3, :] > 0.0,
                    jnp.float32(-1.0), jnp.float32(1.0))   # (1, tm)
    xyz = x[0:3, :] * sgn                             # lattice[...,0:3][w] *= -1

    # linear_lowf positional encoding, freqs 1..enc_dim, computed directly:
    # per-coordinate (E, tm) slabs via sublane/lane broadcast -> aligned concat
    # at offsets 0, E, 2E; sin/cos on the full (3E, tm) tensor (EUP).
    freqs = freqs_ref[...]                            # (E, 1) f32 = 1..E
    kx = xyz[0:1, :] * freqs                          # (E, tm)
    ky = xyz[1:2, :] * freqs
    kz = xyz[2:3, :] * freqs
    k = jnp.concatenate([kx, ky, kz], axis=0)         # (3E, tm)
    s = jnp.sin(k)
    c = jnp.cos(k)

    # feature slab: [sin | cos | z-latent + zero pad] -> (K_pad, tm), offsets
    # 0 / 3E / 6E (8-aligned for E multiple of 8); single cast to bf16.
    pieces = [s, c]
    if x.shape[0] > 3:                                # z latent + K padding
        pieces.append(x[3:, :])
    feat = jnp.concatenate(pieces, axis=0).astype(jnp.bfloat16)

    # ResidLinearMLP (transposed): h = W^T @ feat ; bf16 inputs, f32 accumulate
    h = jnp.dot(w1_ref[...], feat,
                preferred_element_type=jnp.float32) + b1_ref[...]
    h = jnp.maximum(h, 0.0)                           # (H, tm)
    for l in range(nlayers):
        z = (jnp.dot(wres_ref[l], h.astype(jnp.bfloat16),
                     preferred_element_type=jnp.float32)
             + bres_ref[l] + h)
        h = jnp.maximum(z, 0.0)
    out = jnp.dot(wout_ref[...], h.astype(jnp.bfloat16),
                  preferred_element_type=jnp.float32) + bout_ref[...]  # (2, tm)

    r0 = out[0:1, :]
    r1 = out[1:2, :] * sgn                            # result[..., 1][w] *= -1
    # fused hermitian combine, lane-dense (2, tm) store:
    #   row 0: image[..., 0:cc] = r0 - r1 ; row 1: r0 + r1 (pre-reversal)
    o_ref[...] = jnp.concatenate([r0 - r1, r0 + r1], axis=0)


# ---------------------------------------------------------------------------
# Host-side, one-off weight preparation: permute W1 rows to the kernel feature
# order, zero-pad K to a multiple of 8, transpose for the (channels, rows)
# layout, cast matmul weights to bf16.
# ---------------------------------------------------------------------------
def prepare_params(params, *, enc_dim, zdim):
    w1, b1, wres, bres, wout, bout = params
    E = enc_dim
    in_dim = 6 * E + zdim
    K_pad = _round_up(in_dim, 8)

    # kernel feature order:
    #   rows [0,3E)  : sin(f*coord_j), j = row // E, f = row % E + 1
    #   rows [3E,6E) : cos(f*coord_j)
    #   rows [6E,6E+zdim) : latent z ; remaining rows: zero padding
    w1np = np.asarray(w1, dtype=np.float32)           # (in_dim, H)
    H = w1np.shape[1]
    w1_pad = np.zeros((K_pad, H), dtype=np.float32)
    for j in range(3):
        for f in range(E):
            w1_pad[j * E + f] = w1np[j * 2 * E + f]            # sin rows
            w1_pad[3 * E + j * E + f] = w1np[j * 2 * E + E + f]  # cos rows
    for t in range(zdim):
        w1_pad[6 * E + t] = w1np[6 * E + t]                    # latent rows

    w1T = jnp.asarray(w1_pad.T, dtype=jnp.bfloat16)              # (H, K_pad)
    b1T = jnp.asarray(b1).T.astype(jnp.float32)                  # (H, 1)
    wresT = jnp.transpose(wres, (0, 2, 1)).astype(jnp.bfloat16)  # (L, H, H)
    bresT = jnp.transpose(bres, (0, 2, 1)).astype(jnp.float32)   # (L, H, 1)
    woutT = jnp.asarray(wout).T.astype(jnp.bfloat16)             # (2, H)
    boutT = jnp.asarray(bout).T.astype(jnp.float32)              # (2, 1)
    freqs_col = jnp.arange(1, E + 1, dtype=jnp.float32).reshape(E, 1)
    return (freqs_col, w1T, b1T, wresT, bresT, woutT, boutT)


def decode_pallas(lattice_cc, prepped, *, enc_dim, zdim, nlayers, tm=2048):
    """lattice_cc: (B, cc, 3+zdim) -> (diff, summ), each (B, cc):
    diff = r0 - r1, summ = r0 + r1 (hermitian-adjusted decoder outputs)."""
    freqs_col, w1T, b1T, wresT, bresT, woutT, boutT = prepped
    B, CC, C = lattice_cc.shape
    M = B * CC
    E = enc_dim
    K_pad = w1T.shape[1]
    C_pad = 3 + (K_pad - 6 * E)            # coords + (latent + zero K-padding)

    # Balanced tail tiling: choose the number of tiles from the requested tm,
    # then shrink the tile so the padded waste is spread evenly (multiple of
    # 256 for clean MXU column streaming / lane alignment).
    n_tiles = -(-M // tm)                              # ceil(M / tm)
    tm_eff = _round_up(-(-M // n_tiles), 256)          # <= round_up(tm, 256)
    M_pad = n_tiles * tm_eff

    # rows -> lanes: (M, C) -> (C_pad, M_pad), zero padding on both axes.
    # One-off transpose makes all in-kernel ops / DMAs lane-dense.
    x = lattice_cc.reshape(M, C).T.astype(jnp.float32)        # (C, M)
    x = jnp.pad(x, ((0, C_pad - C), (0, M_pad - M)))

    kernel = functools.partial(_decoder_kernel, enc_dim=enc_dim,
                               nlayers=nlayers)
    out = pl.pallas_call(
        kernel,
        out_shape=jax.ShapeDtypeStruct((2, M_pad), jnp.float32),
        grid=(n_tiles,),
        in_specs=[
            pl.BlockSpec((C_pad, tm_eff), lambda i: (0, i)),
            pl.BlockSpec(freqs_col.shape, lambda i: (0, 0)),
            pl.BlockSpec(w1T.shape, lambda i: (0, 0)),
            pl.BlockSpec(b1T.shape, lambda i: (0, 0)),
            pl.BlockSpec(wresT.shape, lambda i: (0, 0, 0)),
            pl.BlockSpec(bresT.shape, lambda i: (0, 0, 0)),
            pl.BlockSpec(woutT.shape, lambda i: (0, 0)),
            pl.BlockSpec(boutT.shape, lambda i: (0, 0)),
        ],
        out_specs=pl.BlockSpec((2, tm_eff), lambda i: (0, i)),
        compiler_params=pltpu.CompilerParams(
            # row tiles are independent; shard across v7x's 2 TCs
            dimension_semantics=("parallel",),
            vmem_limit_bytes=16 * 1024 * 1024,
        ),
    )(x, freqs_col, w1T, b1T, wresT, bresT, woutT, boutT)

    out = out[:, :M]
    return out[0].reshape(B, CC), out[1].reshape(B, CC)


@functools.partial(jax.jit, static_argnames=("enc_dim", "zdim", "nlayers", "tm"))
def ft_positional_decoder_forward(lattice, prepped, *, enc_dim, zdim, nlayers,
                                  tm=2048):
    """FTPositionalDecoder.forward: lattice (B, N, 3+zdim) -> image (B, N)."""
    N = lattice.shape[-2]
    c = N // 2
    cc = c + 1 if N % 2 == 1 else c
    diff, summ = decode_pallas(lattice[..., 0:cc, :], prepped,
                               enc_dim=enc_dim, zdim=zdim, nlayers=nlayers,
                               tm=tm)
    image_top = diff                                  # image[..., 0:cc]
    image_bot = summ[..., c - 1::-1]                  # image[..., cc:]
    return jnp.concatenate([image_top, image_bot], axis=-1)


# ---------------------------------------------------------------------------
# Pure-JAX f32 reference (mirrors the PyTorch code) for validation
# ---------------------------------------------------------------------------
def _reference_forward(lattice, params, *, enc_dim, zdim, nlayers):
    w1, b1, wres, bres, wout, bout = params
    N = lattice.shape[-2]
    c = N // 2
    cc = c + 1 if N % 2 == 1 else c
    lat = lattice[..., 0:cc, :]
    w_mask = lat[..., 2:3] > 0.0
    xyz = jnp.where(w_mask, -lat[..., 0:3], lat[..., 0:3])
    freqs = jnp.arange(1, enc_dim + 1, dtype=jnp.float32)
    k = xyz[..., :, None] * freqs                     # (..., 3, enc_dim)
    x = jnp.concatenate([jnp.sin(k), jnp.cos(k)], -1) # (..., 3, 2*enc_dim)
    x = x.reshape(*lat.shape[:-1], 6 * enc_dim)
    if zdim > 0:
        x = jnp.concatenate([x, lat[..., 3:]], -1)
    h = jnp.maximum(x @ w1 + b1[0], 0.0)
    for l in range(nlayers):
        h = jnp.maximum(h @ wres[l] + bres[l, 0] + h, 0.0)
    out = h @ wout + bout[0]
    out = out.at[..., 1].set(jnp.where(w_mask[..., 0], -out[..., 1], out[..., 1]))
    r0, r1 = out[..., 0], out[..., 1]
    return jnp.concatenate([r0 - r1, (r0 + r1)[..., c - 1::-1]], axis=-1)


# ---------------------------------------------------------------------------
def _init_params(key, in_dim, hidden_dim, nlayers, out_dim=2):
    ks = jax.random.split(key, 6)

    def lin(k, fan_in, shape):
        bound = 1.0 / jnp.sqrt(fan_in)
        return jax.random.uniform(k, shape, jnp.float32, -bound, bound)

    w1 = lin(ks[0], in_dim, (in_dim, hidden_dim))
    b1 = lin(ks[1], in_dim, (1, hidden_dim))
    wres = lin(ks[2], hidden_dim, (nlayers, hidden_dim, hidden_dim))
    bres = lin(ks[3], hidden_dim, (nlayers, 1, hidden_dim))
    wout = lin(ks[4], hidden_dim, (hidden_dim, out_dim))
    bout = lin(ks[5], hidden_dim, (1, out_dim))
    return (w1, b1, wres, bres, wout, bout)


if __name__ == "__main__":
    # Module config (small): D=16, zdim=2 -> module in_dim arg = 5,
    # enc_dim = D//2 = 8, MLP in_dim = 3*enc_dim*2 + zdim = 50 (padded to 56),
    # hidden_dim = 32, nlayers = 2, activation = ReLU.
    D = 16
    enc_dim = D // 2
    zdim = 2
    hidden_dim = 32
    nlayers = 2
    mlp_in_dim = 3 * enc_dim * 2 + zdim

    B, N = 2, 64  # lattice: B x N x (3+zdim)

    key = jax.random.PRNGKey(0)
    kp, kc, kz = jax.random.split(key, 3)
    params = _init_params(kp, mlp_in_dim, hidden_dim, nlayers)
    prepped = prepare_params(params, enc_dim=enc_dim, zdim=zdim)

    coords = jax.random.uniform(kc, (B, N, 3), jnp.float32, -0.5, 0.5)
    zlat = 0.1 * jax.random.normal(kz, (B, N, zdim), jnp.float32)
    lattice = jnp.concatenate([coords, zlat], axis=-1)

    image = ft_positional_decoder_forward(lattice, prepped,
                                          enc_dim=enc_dim, zdim=zdim,
                                          nlayers=nlayers)
    image = jax.block_until_ready(image)

    ref = _reference_forward(lattice, params,
                             enc_dim=enc_dim, zdim=zdim, nlayers=nlayers)
    assert image.shape == (B, N)
    # bf16 MXU inputs (f32 accumulation) -> loosened tolerance vs f32 reference
    assert jnp.allclose(image, ref, atol=5e-2, rtol=5e-2), (
        "mismatch vs reference; max abs err = "
        f"{float(jnp.max(jnp.abs(image - ref)))}")

    # TODO(synk): eval_volume (host-side per-slice loop + inverse FFT volume
    # reconstruction) and the 'gaussian'/'geom_*' encodings have no clean
    # Pallas equivalent here; only forward/decode with linear_lowf are done.
    print("KERNEL_OK")
</pallas_src>

<mosaic_0001>
module attributes {stable_mosaic.version = 11 : i64} {
  func.func @_decoder_kernel(%arg0: i32, %arg1: memref<11x256xf32, #tpu.memory_space<vmem>>, %arg2: memref<8x1xf32, #tpu.memory_space<vmem>>, %arg3: memref<32x56xbf16, #tpu.memory_space<vmem>>, %arg4: memref<32x1xf32, #tpu.memory_space<vmem>>, %arg5: memref<2x32x32xbf16, #tpu.memory_space<vmem>>, %arg6: memref<2x32x1xf32, #tpu.memory_space<vmem>>, %arg7: memref<2x32xbf16, #tpu.memory_space<vmem>>, %arg8: memref<2x1xf32, #tpu.memory_space<vmem>>, %arg9: memref<2x256xf32, #tpu.memory_space<vmem>>) attributes {dimension_semantics = [#tpu.dimension_semantics<parallel>], iteration_bounds = array<i64: 1>, scalar_prefetch = 0 : i64, scratch_operands = 0 : i64, tpu.core_type = #tpu.core_type<tc>, window_params = [{transform_indices = @transform_0, window_bounds = array<i64: 11, 256>}, {pipeline_mode = #tpu.pipeline_mode<synchronous>, transform_indices = @transform_1, window_bounds = array<i64: 8, 1>}, {pipeline_mode = #tpu.pipeline_mode<synchronous>, transform_indices = @transform_2, window_bounds = array<i64: 32, 56>}, {pipeline_mode = #tpu.pipeline_mode<synchronous>, transform_indices = @transform_3, window_bounds = array<i64: 32, 1>}, {pipeline_mode = #tpu.pipeline_mode<synchronous>, transform_indices = @transform_4, window_bounds = array<i64: 2, 32, 32>}, {pipeline_mode = #tpu.pipeline_mode<synchronous>, transform_indices = @transform_5, window_bounds = array<i64: 2, 32, 1>}, {pipeline_mode = #tpu.pipeline_mode<synchronous>, transform_indices = @transform_6, window_bounds = array<i64: 2, 32>}, {pipeline_mode = #tpu.pipeline_mode<synchronous>, transform_indices = @transform_7, window_bounds = array<i64: 2, 1>}, {transform_indices = @transform_8, window_bounds = array<i64: 2, 256>}]} {
    %c0 = arith.constant 0 : index
    %c0_0 = arith.constant 0 : index
    %0 = vector.load %arg1[%c0, %c0_0] : memref<11x256xf32, #tpu.memory_space<vmem>>, vector<11x256xf32>
    %1 = vector.extract_strided_slice %0 {offsets = [2, 0], sizes = [1, 256], strides = [1, 1]} : vector<11x256xf32> to vector<1x256xf32>
    %cst = arith.constant 0.000000e+00 : f32
    %2 = vector.broadcast %cst : f32 to vector<1x256xf32>
    %3 = arith.cmpf ogt, %1, %2 : vector<1x256xf32>
    %cst_1 = arith.constant -1.000000e+00 : f32
    %cst_2 = arith.constant 1.000000e+00 : f32
    %4 = vector.broadcast %cst_1 : f32 to vector<1x256xf32>
    %5 = vector.broadcast %cst_2 : f32 to vector<1x256xf32>
    %6 = arith.select %3, %4, %5 : vector<1x256xi1>, vector<1x256xf32>
    %7 = vector.extract_strided_slice %0 {offsets = [0, 0], sizes = [3, 256], strides = [1, 1]} : vector<11x256xf32> to vector<3x256xf32>
    %8 = vector.broadcast %6 : vector<1x256xf32> to vector<3x256xf32>
    %9 = arith.mulf %7, %8 : vector<3x256xf32>
    %c0_3 = arith.constant 0 : index
    %c0_4 = arith.constant 0 : index
    %10 = vector.load %arg2[%c0_3, %c0_4] : memref<8x1xf32, #tpu.memory_space<vmem>>, vector<8x1xf32>
    %11 = vector.extract_strided_slice %9 {offsets = [0, 0], sizes = [1, 256], strides = [1, 1]} : vector<3x256xf32> to vector<1x256xf32>
    %12 = vector.broadcast %11 : vector<1x256xf32> to vector<8x256xf32>
    %13 = vector.broadcast %10 : vector<8x1xf32> to vector<8x256xf32>
    %14 = arith.mulf %12, %13 : vector<8x256xf32>
    %15 = vector.extract_strided_slice %9 {offsets = [1, 0], sizes = [1, 256], strides = [1, 1]} : vector<3x256xf32> to vector<1x256xf32>
    %16 = vector.broadcast %15 : vector<1x256xf32> to vector<8x256xf32>
    %17 = vector.broadcast %10 : vector<8x1xf32> to vector<8x256xf32>
    %18 = arith.mulf %16, %17 : vector<8x256xf32>
    %19 = vector.extract_strided_slice %9 {offsets = [2, 0], sizes = [1, 256], strides = [1, 1]} : vector<3x256xf32> to vector<1x256xf32>
    %20 = vector.broadcast %19 : vector<1x256xf32> to vector<8x256xf32>
    %21 = vector.broadcast %10 : vector<8x1xf32> to vector<8x256xf32>
    %22 = arith.mulf %20, %21 : vector<8x256xf32>
    %23 = tpu.concatenate %14, %18, %22 in 0 : vector<8x256xf32>, vector<8x256xf32>, vector<8x256xf32> -> vector<24x256xf32>
    %24 = math.sin %23 : vector<24x256xf32>
    %25 = math.cos %23 : vector<24x256xf32>
    %26 = vector.extract_strided_slice %0 {offsets = [3, 0], sizes = [8, 256], strides = [1, 1]} : vector<11x256xf32> to vector<8x256xf32>
    %27 = tpu.concatenate %24, %25, %26 in 0 : vector<24x256xf32>, vector<24x256xf32>, vector<8x256xf32> -> vector<56x256xf32>
    %28 = arith.truncf %27 : vector<56x256xf32> to vector<56x256xbf16>
    %c0_5 = arith.constant 0 : index
    %c0_6 = arith.constant 0 : index
    %29 = vector.load %arg3[%c0_5, %c0_6] : memref<32x56xbf16, #tpu.memory_space<vmem>>, vector<32x56xbf16>
    %cst_7 = arith.constant dense<0.000000e+00> : vector<32x256xf32>
    %30 = tpu.matmul %29, %28, %cst_7 {dimension_numbers = #tpu.dot_dimension_numbers<[1], [0], [0], [1], [0, 0, 1, 1], [], []>} : vector<32x56xbf16>, vector<56x256xbf16>, vector<32x256xf32> -> vector<32x256xf32>
    %c0_8 = arith.constant 0 : index
    %c0_9 = arith.constant 0 : index
    %31 = vector.load %arg4[%c0_8, %c0_9] : memref<32x1xf32, #tpu.memory_space<vmem>>, vector<32x1xf32>
    %32 = vector.broadcast %31 : vector<32x1xf32> to vector<32x256xf32>
    %33 = arith.addf %30, %32 : vector<32x256xf32>
    %cst_10 = arith.constant 0.000000e+00 : f32
    %34 = vector.broadcast %cst_10 : f32 to vector<32x256xf32>
    %35 = arith.maximumf %33, %34 : vector<32x256xf32>
    %c0_11 = arith.constant 0 : index
    %c0_12 = arith.constant 0 : index
    %c0_13 = arith.constant 0 : index
    %36 = vector.load %arg5[%c0_11, %c0_12, %c0_13] : memref<2x32x32xbf16, #tpu.memory_space<vmem>>, vector<1x32x32xbf16>
    %37 = vector.shape_cast %36 : vector<1x32x32xbf16> to vector<32x32xbf16>
    %38 = arith.truncf %35 : vector<32x256xf32> to vector<32x256xbf16>
    %cst_14 = arith.constant dense<0.000000e+00> : vector<32x256xf32>
    %39 = tpu.matmul %37, %38, %cst_14 {dimension_numbers = #tpu.dot_dimension_numbers<[1], [0], [0], [1], [0, 0, 1, 1], [], []>} : vector<32x32xbf16>, vector<32x256xbf16>, vector<32x256xf32> -> vector<32x256xf32>
    %c0_15 = arith.constant 0 : index
    %c0_16 = arith.constant 0 : index
    %c0_17 = arith.constant 0 : index
    %40 = vector.load %arg6[%c0_15, %c0_16, %c0_17] : memref<2x32x1xf32, #tpu.memory_space<vmem>>, vector<1x32x1xf32>
    %41 = vector.shape_cast %40 : vector<1x32x1xf32> to vector<32x1xf32>
    %42 = vector.broadcast %41 : vector<32x1xf32> to vector<32x256xf32>
    %43 = arith.addf %39, %42 : vector<32x256xf32>
    %44 = arith.addf %43, %35 : vector<32x256xf32>
    %cst_18 = arith.constant 0.000000e+00 : f32
    %45 = vector.broadcast %cst_18 : f32 to vector<32x256xf32>
    %46 = arith.maximumf %44, %45 : vector<32x256xf32>
    %c1 = arith.constant 1 : index
    %c0_19 = arith.constant 0 : index
    %c0_20 = arith.constant 0 : index
    %47 = vector.load %arg5[%c1, %c0_19, %c0_20] : memref<2x32x32xbf16, #tpu.memory_space<vmem>>, vector<1x32x32xbf16>
    %48 = vector.shape_cast %47 : vector<1x32x32xbf16> to vector<32x32xbf16>
    %49 = arith.truncf %46 : vector<32x256xf32> to vector<32x256xbf16>
    %cst_21 = arith.constant dense<0.000000e+00> : vector<32x256xf32>
    %50 = tpu.matmul %48, %49, %cst_21 {dimension_numbers = #tpu.dot_dimension_numbers<[1], [0], [0], [1], [0, 0, 1, 1], [], []>} : vector<32x32xbf16>, vector<32x256xbf16>, vector<32x256xf32> -> vector<32x256xf32>
    %c1_22 = arith.constant 1 : index
    %c0_23 = arith.constant 0 : index
    %c0_24 = arith.constant 0 : index
    %51 = vector.load %arg6[%c1_22, %c0_23, %c0_24] : memref<2x32x1xf32, #tpu.memory_space<vmem>>, vector<1x32x1xf32>
    %52 = vector.shape_cast %51 : vector<1x32x1xf32> to vector<32x1xf32>
    %53 = vector.broadcast %52 : vector<32x1xf32> to vector<32x256xf32>
    %54 = arith.addf %50, %53 : vector<32x256xf32>
    %55 = arith.addf %54, %46 : vector<32x256xf32>
    %cst_25 = arith.constant 0.000000e+00 : f32
    %56 = vector.broadcast %cst_25 : f32 to vector<32x256xf32>
    %57 = arith.maximumf %55, %56 : vector<32x256xf32>
    %c0_26 = arith.constant 0 : index
    %c0_27 = arith.constant 0 : index
    %58 = vector.load %arg7[%c0_26, %c0_27] : memref<2x32xbf16, #tpu.memory_space<vmem>>, vector<2x32xbf16>
    %59 = arith.truncf %57 : vector<32x256xf32> to vector<32x256xbf16>
    %cst_28 = arith.constant dense<0.000000e+00> : vector<2x256xf32>
    %60 = tpu.matmul %58, %59, %cst_28 {dimension_numbers = #tpu.dot_dimension_numbers<[1], [0], [0], [1], [0, 0, 1, 1], [], []>} : vector<2x32xbf16>, vector<32x256xbf16>, vector<2x256xf32> -> vector<2x256xf32>
    %c0_29 = arith.constant 0 : index
    %c0_30 = arith.constant 0 : index
    %61 = vector.load %arg8[%c0_29, %c0_30] : memref<2x1xf32, #tpu.memory_space<vmem>>, vector<2x1xf32>
    %62 = vector.broadcast %61 : vector<2x1xf32> to vector<2x256xf32>
    %63 = arith.addf %60, %62 : vector<2x256xf32>
    %64 = vector.extract_strided_slice %63 {offsets = [0, 0], sizes = [1, 256], strides = [1, 1]} : vector<2x256xf32> to vector<1x256xf32>
    %65 = vector.extract_strided_slice %63 {offsets = [1, 0], sizes = [1, 256], strides = [1, 1]} : vector<2x256xf32> to vector<1x256xf32>
    %66 = arith.mulf %65, %6 : vector<1x256xf32>
    %67 = arith.subf %64, %66 : vector<1x256xf32>
    %68 = arith.addf %64, %66 : vector<1x256xf32>
    %69 = tpu.concatenate %67, %68 in 0 : vector<1x256xf32>, vector<1x256xf32> -> vector<2x256xf32>
    %c0_31 = arith.constant 0 : index
    %c0_32 = arith.constant 0 : index
    %70 = vector.load %arg9[%c0_31, %c0_32] : memref<2x256xf32, #tpu.memory_space<vmem>>, vector<2x256xf32>
    tpu.vector_store %arg9[%c0_31, %c0_32], %69 {strides = array<i32>} : memref<2x256xf32, #tpu.memory_space<vmem>>, vector<2x256xf32>,
    return
  }
  func.func @transform_0(%arg0: i32) -> (i32, i32) {
    %c0_i32 = arith.constant 0 : i32
    %c0_i32_0 = arith.constant 0 : i32
    return %c0_i32, %arg0 : i32, i32
  }
  func.func @transform_1(%arg0: i32) -> (i32, i32) {
    %c0_i32 = arith.constant 0 : i32
    %c0_i32_0 = arith.constant 0 : i32
    %c0_i32_1 = arith.constant 0 : i32
    return %c0_i32, %c0_i32_0 : i32, i32
  }
  func.func @transform_2(%arg0: i32) -> (i32, i32) {
    %c0_i32 = arith.constant 0 : i32
    %c0_i32_0 = arith.constant 0 : i32
    %c0_i32_1 = arith.constant 0 : i32
    return %c0_i32, %c0_i32_0 : i32, i32
  }
  func.func @transform_3(%arg0: i32) -> (i32, i32) {
    %c0_i32 = arith.constant 0 : i32
    %c0_i32_0 = arith.constant 0 : i32
    %c0_i32_1 = arith.constant 0 : i32
    return %c0_i32, %c0_i32_0 : i32, i32
  }
  func.func @transform_4(%arg0: i32) -> (i32, i32, i32) {
    %c0_i32 = arith.constant 0 : i32
    %c0_i32_0 = arith.constant 0 : i32
    %c0_i32_1 = arith.constant 0 : i32
    %c0_i32_2 = arith.constant 0 : i32
    return %c0_i32, %c0_i32_0, %c0_i32_1 : i32, i32, i32
  }
  func.func @transform_5(%arg0: i32) -> (i32, i32, i32) {
    %c0_i32 = arith.constant 0 : i32
    %c0_i32_0 = arith.constant 0 : i32
    %c0_i32_1 = arith.constant 0 : i32
    %c0_i32_2 = arith.constant 0 : i32
    return %c0_i32, %c0_i32_0, %c0_i32_1 : i32, i32, i32
  }
  func.func @transform_6(%arg0: i32) -> (i32, i32) {
    %c0_i32 = arith.constant 0 : i32
    %c0_i32_0 = arith.constant 0 : i32
    %c0_i32_1 = arith.constant 0 : i32
    return %c0_i32, %c0_i32_0 : i32, i32
  }
  func.func @transform_7(%arg0: i32) -> (i32, i32) {
    %c0_i32 = arith.constant 0 : i32
    %c0_i32_0 = arith.constant 0 : i32
    %c0_i32_1 = arith.constant 0 : i32
    return %c0_i32, %c0_i32_0 : i32, i32
  }
  func.func @transform_8(%arg0: i32) -> (i32, i32) {
    %c0_i32 = arith.constant 0 : i32
    %c0_i32_0 = arith.constant 0 : i32
    return %c0_i32, %arg0 : i32, i32
  }
}

</mosaic_0001>

<bundles_post_ra>
// kernel: squeeze.2
= control target key start
LH: loop header
LB: loop body
LE: loop exit
PB: predicated region body
PF: predicated region fallthrough
CT: control target
= control target key end

     0   :  { %vm8_vm0 = vcmask 261120   ;;  %s42_s0 = inlined_call_operand.vmem [shape: f32[64], index: 0, kind: input, shape index: {}]   ;;  %s43_s1 = inlined_call_operand.vmem [shape: f32[2,32], index: 1, kind: output, shape index: {}]  }
   0x1   :  { %v5_v0 = vld [vmem:[%s42_s0] sm:$0x1]  ;;  %s25_s0 = smov 96  }
   0x2   :  { %6 = vst [vmem:[#allocation1] sm:$0x1] %v5_v0 }
   0x9   :  { %v10_v1 = vld [vmem:[#allocation1] sm:$0x1]  }
   0xa   :  { %v7_v2 = vld [vmem:[#allocation1] sm:$0x1]   ;;  %11 = vrot.lane.b32.xlu0 %v10_v1, %s25_s0 }
   0xb   :  { %9 = vst.msk [vmem:[#allocation0] sm:$0x1] %vm8_vm0, %v7_v2  }
  0x7c   :  { %v12_v3 = vpop.permute.xlu0 %11  }
  0x7d   :  { %15 = vst.msk [vmem:[#allocation0 + $0x1] sm:$0x1] %vm8_vm0, %v12_v3  }
  0x84   :  { %v20_v4 = vld [vmem:[#allocation0] sm:$0x3] }
  0x85   :  { %23 = vst [vmem:[%s43_s1] sm:$0x3] %v20_v4 }

// kernel: ft_positional_decoder_forward.1
= control target key start
LH: loop header
LB: loop body
LE: loop exit
PB: predicated region body
PF: predicated region fallthrough
CT: control target
= control target key end

     0   :  { %v38_v0 = vlaneseq  ;;  %v1930_v1 = vmov 0   ;;  %v1931_v8 = vmov 1.0   ;;  %vm1330_vm2 = vcmask 1044480   ;;  %s2661_s1 = inlined_call_operand.vmem [shape: f32[8,1], index: 1, kind: input, shape index: {}]   ;;  %s2662_s3 = inlined_call_operand.vmem [shape: f32[32,1], index: 3, kind: input, shape index: {}]   ;;  %s2663_s0 = inlined_call_operand.vmem [shape: f32[11,256], index: 0, kind: input, shape index: {}]   ;;  %s2664_s5 = inlined_call_operand.vmem [shape: f32[2,32,1], index: 5, kind: input, shape index: {}]   ;;  %s2665_s2 = inlined_call_operand.vmem [shape: bf16[32,56], index: 2, kind: input, shape index: {}]   ;;  %s2666_s7 = inlined_call_operand.vmem [shape: f32[2,1], index: 7, kind: input, shape index: {}]   ;;  %s2667_s4 = inlined_call_operand.vmem [shape: bf16[2,32,32], index: 4, kind: input, shape index: {}]   ;;  %s2668_s6 = inlined_call_operand.vmem [shape: bf16[2,32], index: 6, kind: input, shape index: {}]   ;;  %s2669_s8 = inlined_call_operand.vmem [shape: f32[2,256], index: 8, kind: output, shape index: {}]  }
   0x1   :  { %1898 = vset.pattern.permute.xlu0 %v1930_v1  ;;  %v48_v2 = vld [vmem:[%s2661_s1] sm:$0xff]  ;;  %1431 = vmatprep.mubr.bf16.mxu0 %v1930_v1  ;;  %v1353_v4 = vld [vmem:[%s2662_s3 + $0x10] sm:$0xff]  ;;  %v31_v5 = vld [vmem:[%s2663_s0 + $0x8] sm:$0xff]  ;;  %vm1392_vm3 = vcmask 1043456  }
   0x2   :  { %59 = vperm.xlu0 %1898, %v48_v2   ;;  %v39_v3 = vshrl.u32 %v38_v0, 7  ;;  %1899 = vset.pattern.permute.xlu1 %v1930_v1  ;;  %v30_v6 = vld [vmem:[%s2663_s0] sm:$0xff]  ;;  %vm35_vm0 = vcmp.gt.f32.partialorder %v31_v5, 0.0  ;;  %v1352_v13 = vld [vmem:[%s2662_s3 + $0x8] sm:$0xff]  ;;  %v1471_v18 = vld [vmem:[%s2664_s5 + $0x18] sm:$0xff]  ;;  %v1334_v23 = vrot.slane %v31_v5, 3 }
   0x3   :  { %1541 = vmatprep.mubr.bf16.mxu1 %v1930_v1  ;;  %v1999_v9 = vsel %vm35_vm0, -1.0, %v1931_v8  ;;  %vm34_vm1 = vcmp.gt.f32.partialorder %v30_v6, 0.0  ;;  %v1469_v20 = vld [vmem:[%s2664_s5 + $0x8] sm:$0xff]  ;;  %v1859_v21 = vld [vmem:[%s2664_s5 + $0x38] sm:$0xff]  ;;  %v1331_v24 = vrot.slane %v30_v6, 3 }
   0x4   :  { %v40_v7 = vsub.s32 2, %v39_v3  ;;  %v51_v11 = vsub.s32 0, %v39_v3  ;;  %v2002_v12 = vsel %vm34_vm1, -1.0, %v1931_v8  ;;  %v33_v22 = vld [vmem:[%s2663_s0 + $0x18] sm:$0x7]  ;;  %v1857_v27 = vld [vmem:[%s2664_s5 + $0x28] sm:$0xff] }
   0x5   :  { %v1335_v25 = vrot.slane %v33_v22, 3  ;;  %v32_v26 = vld [vmem:[%s2663_s0 + $0x10] sm:$0x7]  ;;  %v66_v34 = vsub.s32 1, %v39_v3 }
   0x6   :  { %1367 = vperm.xlu0 %1898, %v1353_v4   ;;  %v45_v10 = vrot.slane %v1999_v9, %v40_v7  ;;  %v41_v14 = vrot.slane %v2002_v12, %v40_v7  ;;  %v1332_v28 = vrot.slane %v32_v26, 3 }
   0x7   :  { %v1336_v29 = vsel %vm1330_vm2, %v1334_v23, %v1335_v25 }
   0x8   :  { %v47_v15 = vmul.f32 %v45_v10, %v31_v5  ;;  %v46_v16 = vmul.f32 %v41_v14, %v30_v6  ;;  %v1346_v30 = vpack.c.bf16 %v1336_v29, %v1336_v29  ;;  %v1333_v31 = vsel %vm1330_vm2, %v1331_v24, %v1332_v28 }
   0x9   :  { %v1345_v32 = vpack.c.bf16 %v1333_v31, %v1333_v31  ;;  %v1934_v24 = vmov 2131351028   ;;  %v1935_v28 = vmov 2102212464   ;;  %v1936_v31 = vmov 920167782  }
   0xa   :  { %1362 = vperm.xlu0 %1898, %v1352_v13   ;;  %v56_v17 = vrot.slane %v47_v15, %v51_v11  ;;  %v52_v19 = vrot.slane %v46_v16, %v51_v11  ;;  %1845 = vmatprep.subr.msk.bf16.mxu0 %vm1392_vm3, %v1346_v30  ;;  %v71_v35 = vrot.slane %v47_v15, %v66_v34 }
   0xb   :  { %v1394_v33 = vsel %vm1392_vm3, %v1345_v32, 0  ;;  %v81_v36 = vrot.slane %v47_v15, %v40_v7  ;;  %v67_v37 = vrot.slane %v46_v16, %v66_v34  ;;  %v77_v38 = vrot.slane %v46_v16, %v40_v7 }
   0xc   :  { %1408 = vmatpush1.bf16.msra.mxu0 %v1394_v33 }
   0xe   :  { %1489 = vperm.xlu0 %1898, %v1471_v18   ;;  %v1932_v18 = vmov 683565275  }
  0x12   :  { %1479 = vperm.xlu0 %1898, %v1469_v20  }
  0x16   :  { %1609 = vperm.xlu0 %1898, %v1859_v21   ;;  %v1933_v21 = vmov 2475754826  }
  0x1a   :  { %1599 = vperm.xlu0 %1898, %v1857_v27  }
  0x7d   :  { %v60_v39 = vpop.permute.xlu0 %59 }
  0x7e   :  { %v2026_v40 = vmul.f32 %v60_v39, %v56_v17  ;;  %v2028_v41 = vmul.f32 %v71_v35, %v60_v39  ;;  %v2030_v42 = vmul.f32 %v81_v36, %v60_v39  ;;  %v2032_v43 = vmul.f32 %v60_v39, %v52_v19 }
  0x7f   :  { %v2034_v44 = vmul.f32 %v67_v37, %v60_v39  ;;  %v2036_v45 = vmul.f32 %v77_v38, %v60_v39  ;;  %v1937_v36 = vmov 1326507024  }
  0x80   :  { %v191_v46 = vand.u32 2139095040, %v2026_v40  ;;  %v399_v47 = vand.u32 2139095040, %v2028_v41  ;;  %v607_v48 = vand.u32 2139095040, %v2030_v42  ;;  %v87_v49 = vand.u32 2139095040, %v2032_v43 }
  0x81   :  { %v295_v50 = vand.u32 2139095040, %v2034_v44  ;;  %v503_v51 = vand.u32 2139095040, %v2036_v45  ;;  %v396_v52 = vand.u32 2147483647, %v2028_v41  ;;  %v604_v20 = vand.u32 2147483647, %v2030_v42 }
  0x82   :  { %v400_v53 = vshrl.u32 %v399_v47, 23  ;;  %v608_v54 = vshrl.u32 %v607_v48, 23  ;;  %v192_v55 = vshrl.u32 %v191_v46, 23  ;;  %v88_v56 = vshrl.u32 %v87_v49, 23 }
  0x83   :  { %v296_v57 = vshrl.u32 %v295_v50, 23  ;;  %v504_v60 = vshrl.u32 %v503_v51, 23  ;;  %v403_v61 = vand.u32 8388607, %v396_v52 }
  0x84   :  { %v1807_v58 = vadd.s32 4294967169, %v400_v53  ;;  %v1815_v59 = vadd.s32 4294967169, %v608_v54  ;;  %v1799_v0 = vadd.s32 4294967169, %v192_v55  ;;  %v1795_v2 = vadd.s32 4294967169, %v88_v56 }
  0x85   :  { %v1803_v3 = vadd.s32 4294967169, %v296_v57  ;;  %v1811_v4 = vadd.s32 4294967169, %v504_v60  ;;  %v404_v5 = vor.u32 8388608, %v403_v61 }
  0x86   :  { %v406_v62 = vadd.s32 1, %v1807_v58  ;;  %v614_v63 = vadd.s32 1, %v1815_v59  ;;  %v2047_v8 = vadd.s32 1, %v1799_v0  ;;  %v2049_v10 = vadd.s32 1, %v1795_v2 }
  0x87   :  { %v2051_v11 = vadd.s32 1, %v1803_v3  ;;  %v2053_v13 = vadd.s32 1, %v1811_v4  ;;  %v2055_v15 = vshll.u32 %v404_v5, 8  ;;  %v611_v3 = vand.u32 8388607, %v604_v20 }
  0x88   :  { %vm407_vm4 = vcmp.gt.s32.totalorder %v406_v62, 0  ;;  %vm615_vm5 = vcmp.gt.s32.totalorder %v614_v63, 0  ;;  %vm199_vm11 = vcmp.gt.s32.totalorder %v2047_v8, 0  ;;  %vm95_vm1 = vcmp.gt.s32.totalorder %v2049_v10, 0 }
  0x89   :  { %v408_v6 = vsel %vm407_vm4, %v406_v62, 0  ;;  %v616_v17 = vsel %vm615_vm5, %v614_v63, 0  ;;  %vm303_vm10 = vcmp.gt.s32.totalorder %v2051_v11, 0  ;;  %vm511_vm2 = vcmp.gt.s32.totalorder %v2053_v13, 0 }
  0x8a   :  { %v410_v7 = vand.u32 31, %v408_v6  ;;  %v409_v16 = vshrl.u32 %v408_v6, 5  ;;  %v618_v38 = vand.u32 31, %v616_v17  ;;  %v617_v57 = vshrl.u32 %v616_v17, 5 }
  0x8b   :  { %vm398_vm4 = vcmp.lt.s32.totalorder %v2028_v41, 0 }
  0x8c   :  { %v411_v14 = vsub.s32 32, %v410_v7  ;;  %v413_v19 = vshll.u32 %v1932_v18, %v410_v7  ;;  %v416_v23 = vshll.u32 %v1933_v21, %v410_v7  ;;  %v419_v26 = vshll.u32 %v1934_v24, %v410_v7 }
  0x8d   :  { %v422_v30 = vshll.u32 %v1935_v28, %v410_v7  ;;  %v425_v35 = vshll.u32 %v1936_v31, %v410_v7  ;;  %vm428_vm6 = vcmp.lt.s32.totalorder %v409_v16, 1  ;;  %vm431_vm7 = vcmp.lt.s32.totalorder %v409_v16, 4 }
  0x8e   :  { %v414_v22 = vshrl.u32 %v1933_v21, %v411_v14  ;;  %v417_v25 = vshrl.u32 %v1934_v24, %v411_v14  ;;  %v412_v27 = vshrl.u32 %v1932_v18, %v411_v14  ;;  %v420_v29 = vshrl.u32 %v1935_v28, %v411_v14 }
  0x8f   :  { %v423_v32 = vshrl.u32 %v1936_v31, %v411_v14  ;;  %v426_v37 = vshrl.u32 %v1937_v36, %v411_v14  ;;  %vm430_vm8 = vcmp.lt.s32.totalorder %v409_v16, 3  ;;  %vm429_vm9 = vcmp.lt.s32.totalorder %v409_v16, 2 }
  0x90   :  { %v415_v33 = vor.u32 %v414_v22, %v413_v19  ;;  %v418_v34 = vor.u32 %v417_v25, %v416_v23  ;;  %v421_v39 = vor.u32 %v420_v29, %v419_v26  ;;  %v619_v4 = vsub.s32 32, %v618_v38 }
  0x91   :  { %v424_v46 = vor.u32 %v423_v32, %v422_v30  ;;  %v427_v47 = vor.u32 %v426_v37, %v425_v35  ;;  %v621_v6 = vshll.u32 %v1932_v18, %v618_v38  ;;  %v624_v7 = vshll.u32 %v1933_v21, %v618_v38 }
  0x92   :  { %v432_v48 = vsel %vm428_vm6, %v412_v27, %v415_v33  ;;  %v436_v49 = vsel %vm428_vm6, %v415_v33, %v418_v34  ;;  %v433_v50 = vsel %vm431_vm7, %v421_v39, 2102212464  ;;  %v440_v53 = vsel %vm428_vm6, %v418_v34, %v421_v39 }
  0x93   :  { %v437_v51 = vsel %vm431_vm7, %v424_v46, 920167782  ;;  %v434_v54 = vsel %vm430_vm8, %v418_v34, %v433_v50  ;;  %v441_v56 = vsel %vm431_vm7, %v427_v47, 1326507024  ;;  %v627_v14 = vshll.u32 %v1934_v24, %v618_v38 }
  0x94   :  { %v438_v55 = vsel %vm430_vm8, %v421_v39, %v437_v51  ;;  %v435_v58 = vsel %vm429_vm9, %v432_v48, %v434_v54  ;;  %v442_v60 = vsel %vm430_vm8, %v424_v46, %v441_v56  ;;  %v622_v16 = vshrl.u32 %v1933_v21, %v619_v4 }
  0x95   :  { %v439_v59 = vsel %vm429_vm9, %v436_v49, %v438_v55  ;;  %v443_v61 = vsel %vm429_vm9, %v440_v53, %v442_v60  ;;  %v451_v5 = vmul.u32 %v2055_v15, %v435_v58  ;;  %v625_v17 = vshrl.u32 %v1934_v24, %v619_v4 }
  0x96   :  { %v2071_v62 = vmul.u32.u64.low %v2055_v15, %v439_v59  ;;  %v2072_v63 = vmul.u32.u64.high %v2055_v15, %v439_v59, %v2071_v62  ;;  %v2076_v0 = vmul.u32.u64.low %v2055_v15, %v443_v61  ;;  %v2077_v2 = vmul.u32.u64.high %v2055_v15, %v443_v61, %v2076_v0 }
  0x97   :  { %v628_v19 = vshrl.u32 %v1935_v28, %v619_v4  ;;  %v630_v22 = vshll.u32 %v1935_v28, %v618_v38  ;;  %v631_v15 = vshrl.u32 %v1936_v31, %v619_v4  ;;  %v633_v25 = vshll.u32 %v1936_v31, %v618_v38 }
  0x98   :  { %v454_v23 = vadd.s32 1, %v2072_v63  ;;  %v634_v26 = vshrl.u32 %v1937_v36, %v619_v4  ;;  %vm453_vm12 = vc.u32 %v2077_v2, %v2071_v62  ;;  %v612_v27 = vor.u32 8388608, %v611_v3 }
  0x99   :  { %v623_v29 = vor.u32 %v622_v16, %v621_v6  ;;  %v626_v30 = vor.u32 %v625_v17, %v624_v7  ;;  %v629_v33 = vor.u32 %v628_v19, %v627_v14  ;;  %v632_v34 = vor.u32 %v631_v15, %v630_v22 }
  0x9a   :  { %v455_v32 = vsel %vm453_vm12, %v454_v23, %v2072_v63  ;;  %v635_v35 = vor.u32 %v634_v26, %v633_v25  ;;  %v304_v37 = vsel %vm303_vm10, %v2051_v11, 0  ;;  %v620_v38 = vshrl.u32 %v1932_v18, %v619_v4 }
  0x9b   :  { %v456_v39 = vadd.s32 %v455_v32, %v451_v5  ;;  %vm636_vm13 = vcmp.lt.s32.totalorder %v617_v57, 1  ;;  %vm637_vm14 = vcmp.lt.s32.totalorder %v617_v57, 2  ;;  %vm638_vm15 = vcmp.lt.s32.totalorder %v617_v57, 3 }
  0x9c   :  { %vm639_vm0 = vcmp.lt.s32.totalorder %v617_v57, 4  ;;  %v644_v46 = vsel %vm636_vm13, %v623_v29, %v626_v30  ;;  %v648_v50 = vsel %vm636_vm13, %v626_v30, %v629_v33  ;;  %v640_v51 = vsel %vm636_vm13, %v620_v38, %v623_v29 }
  0x9d   :  { %v457_v47 = vadd.s32 536870912, %v456_v39  ;;  %v641_v48 = vsel %vm639_vm0, %v629_v33, 2102212464  ;;  %v645_v49 = vsel %vm639_vm0, %v632_v34, 920167782  ;;  %v652_v55 = vshll.u32 %v612_v27, 8 }
  0x9e   :  { %v646_v53 = vsel %vm638_vm15, %v629_v33, %v645_v49  ;;  %v649_v54 = vsel %vm639_vm0, %v635_v35, 1326507024  ;;  %v642_v58 = vsel %vm638_vm15, %v626_v30, %v641_v48  ;;  %v306_v60 = vand.u32 31, %v304_v37 }
  0x9f   :  { %v2101_v56 = vshrl.u32 %v457_v47, 30  ;;  %v647_v11 = vsel %vm637_vm14, %v644_v46, %v646_v53  ;;  %v650_v59 = vsel %vm638_vm15, %v632_v34, %v649_v54  ;;  %v643_v6 = vsel %vm637_vm14, %v640_v51, %v642_v58 }
  0xa0   :  { %v651_v61 = vsel %vm637_vm14, %v648_v50, %v650_v59  ;;  %v2105_v63 = vmul.u32.u64.low %v652_v55, %v647_v11  ;;  %v2106_v0 = vmul.u32.u64.high %v652_v55, %v647_v11, %v2105_v63  ;;  %v2117_v7 = vsel %vm199_vm11, %v2047_v8, 0 }
  0xa1   :  { %v459_v3 = vshll.u32 %v2101_v56, 30  ;;  %v2110_v4 = vmul.u32.u64.low %v652_v55, %v651_v61  ;;  %v2111_v5 = vmul.u32.u64.high %v652_v55, %v651_v61, %v2110_v4  ;;  %v292_v17 = vand.u32 2147483647, %v2034_v44 }
  0xa2   :  { %v662_v16 = vadd.s32 1, %v2106_v0  ;;  %v307_v19 = vsub.s32 32, %v306_v60  ;;  %v659_v57 = vmul.u32 %v652_v55, %v643_v6  ;;  %v2129_v8 = vsel %vm95_vm1, %v2049_v10, 0 }
  0xa3   :  { %v2120_v14 = vsub.s32 %v456_v39, %v459_v3  ;;  %vm661_vm3 = vc.u32 %v2111_v5, %v2105_v63  ;;  %v2133_v15 = vshrl.u32 %v2117_v7, 5  ;;  %v2136_v25 = vsel %vm511_vm2, %v2053_v13, 0 }
  0xa4   :  { %v663_v23 = vsel %vm661_vm3, %v662_v16, %v2106_v0  ;;  %v452_v29 = vadd.s32 %v2071_v62, %v2077_v2  ;;  %v482_v30 = vsub.s32 4, %v2101_v56  ;;  %v299_v10 = vand.u32 8388607, %v292_v17 }
  0xa5   :  { %v462_v22 = vsub.s32 0, %v2120_v14  ;;  %v664_v27 = vadd.s32 %v663_v23, %v659_v57  ;;  %v310_v32 = vshrl.u32 %v1933_v21, %v307_v19  ;;  %v313_v35 = vshrl.u32 %v1934_v24, %v307_v19 }
  0xa6   :  { %v316_v13 = vshrl.u32 %v1935_v28, %v307_v19  ;;  %v315_v39 = vshll.u32 %v1934_v24, %v306_v60  ;;  %v318_v38 = vshll.u32 %v1935_v28, %v306_v60  ;;  %v319_v46 = vshrl.u32 %v1936_v31, %v307_v19 }
  0xa7   :  { %v1808_v26 = vmin.u32 %v462_v22, %v2120_v14  ;;  %v665_v34 = vadd.s32 536870912, %v664_v27  ;;  %v322_v62 = vshrl.u32 %v1937_v36, %v307_v19  ;;  %v305_v48 = vshrl.u32 %v304_v37, 5 }
  0xa8   :  { %v309_v49 = vshll.u32 %v1932_v18, %v306_v60  ;;  %v312_v50 = vshll.u32 %v1933_v21, %v306_v60  ;;  %v317_v51 = vor.u32 %v316_v13, %v315_v39  ;;  %v320_v53 = vor.u32 %v319_v46, %v318_v38 }
  0xa9   :  { %v464_v33 = vclz %v1808_v26  ;;  %v2151_v47 = vshrl.u32 %v665_v34, 30  ;;  %v321_v54 = vshll.u32 %v1936_v31, %v306_v60  ;;  %v300_v58 = vor.u32 8388608, %v299_v10 }
  0xaa   :  { %v308_v11 = vshrl.u32 %v1932_v18, %v307_v19  ;;  %v311_v61 = vor.u32 %v310_v32, %v309_v49  ;;  %v314_v0 = vor.u32 %v313_v35, %v312_v50  ;;  %vm327_vm6 = vcmp.lt.s32.totalorder %v305_v48, 4 }
  0xab   :  { %v1809_v2 = vadd.s32 4294967294, %v464_v33  ;;  %v667_v55 = vshll.u32 %v2151_v47, 30  ;;  %v323_v37 = vor.u32 %v322_v62, %v321_v54  ;;  %vm2163_vm7 = vcmp.le.f32.partialorder %v396_v52, 0.7853982 }
  0xac   :  { %vm324_vm8 = vcmp.lt.s32.totalorder %v305_v48, 1  ;;  %vm326_vm9 = vcmp.lt.s32.totalorder %v305_v48, 3  ;;  %v329_v16 = vsel %vm327_vm6, %v317_v51, 2102212464  ;;  %v333_v22 = vsel %vm327_vm6, %v320_v53, 920167782 }
  0xad   :  { %vm1810_vm5 = vcmp.lt.s32.totalorder %v1809_v2, 0  ;;  %v2159_v6 = vsub.s32 %v664_v27, %v667_v55  ;;  %v332_v27 = vsel %vm324_vm8, %v311_v61, %v314_v0  ;;  %v334_v10 = vsel %vm326_vm9, %v317_v51, %v333_v22 }
  0xae   :  { %v467_v59 = vsel %vm1810_vm5, 0, %v1809_v2  ;;  %v336_v32 = vsel %vm324_vm8, %v314_v0, %v317_v51  ;;  %v337_v52 = vsel %vm327_vm6, %v323_v37, 1326507024  ;;  %v2173_v33 = vand.u32 31, %v2136_v25 }
  0xaf   :  { %v468_v3 = vsub.s32 32, %v467_v59  ;;  %v472_v4 = vsub.s32 4294967266, %v467_v59  ;;  %v469_v19 = vshll.u32 %v2120_v14, %v467_v59  ;;  %v670_v26 = vsub.s32 0, %v2159_v6 }
  0xb0   :  { %vm325_vm10 = vcmp.lt.s32.totalorder %v305_v48, 2  ;;  %v328_v14 = vsel %vm324_vm8, %v308_v11, %v311_v61  ;;  %v338_v39 = vsel %vm326_vm9, %v320_v53, %v337_v52  ;;  %v2180_v49 = vand.u32 31, %v2117_v7 }
  0xb1   :  { %v470_v57 = vshrl.u32 %v452_v29, %v468_v3  ;;  %v473_v23 = vadd.s32 127, %v472_v4  ;;  %v1816_v13 = vmin.u32 %v670_v26, %v2159_v6  ;;  %v330_v29 = vsel %vm326_vm9, %v314_v0, %v329_v16 }
  0xb2   :  { %v335_v62 = vsel %vm325_vm10, %v332_v27, %v334_v10  ;;  %v339_v2 = vsel %vm325_vm10, %v336_v32, %v338_v39  ;;  %v2183_v50 = vand.u32 31, %v2129_v8  ;;  %v483_v51 = vsel %vm398_vm4, %v482_v30, %v2101_v56 }
  0xb3   :  { %v471_v34 = vor.u32 %v470_v57, %v469_v19  ;;  %v474_v35 = vshll.u32 %v473_v23, 23  ;;  %v672_v46 = vclz %v1816_v13  ;;  %v340_v54 = vshll.u32 %v300_v58, 8 }
  0xb4   :  { %v331_v48 = vsel %vm325_vm10, %v328_v14, %v330_v29  ;;  %v2197_v3 = vsel %vm2163_vm7, 0, %v483_v51  ;;  %v515_v56 = vsub.s32 32, %v2173_v33  ;;  %v660_v30 = vadd.s32 %v2105_v63, %v2111_v5 }
  0xb5   :  { %v475_v38 = vor.u32 4788187, %v474_v35  ;;  %v478_v11 = vcvt.s32.f32 %v471_v34  ;;  %v1817_v59 = vadd.s32 4294967294, %v672_v46  ;;  %v690_v4 = vsub.s32 4, %v2151_v47 }
  0xb6   :  { %v2188_v53 = vmul.u32.u64.low %v340_v54, %v339_v2  ;;  %v2189_v61 = vmul.u32.u64.high %v340_v54, %v339_v2, %v2188_v53  ;;  %v2191_v0 = vmul.u32.u64.low %v340_v54, %v335_v62  ;;  %v2192_v37 = vmul.u32.u64.high %v340_v54, %v335_v62, %v2191_v0 }
  0xb7   :  { %v476_v55 = vand.u32 2147483647, %v475_v38  ;;  %vm1818_vm11 = vcmp.lt.s32.totalorder %v1817_v59, 0  ;;  %v500_v16 = vand.u32 2147483647, %v2036_v45  ;;  %v347_v23 = vmul.u32 %v340_v54, %v331_v48 }
  0xb8   :  { %v675_v58 = vsel %vm1818_vm11, 0, %v1817_v59  ;;  %vm349_vm12 = vc.u32 %v2189_v61, %v2191_v0  ;;  %v350_v27 = vadd.s32 1, %v2192_v37  ;;  %v517_v10 = vshll.u32 %v1932_v18, %v2173_v33 }
  0xb9   :  { %v479_v7 = vmul.f32 %v478_v11, %v476_v55  ;;  %v676_v19 = vsub.s32 32, %v675_v58  ;;  %v680_v57 = vsub.s32 4294967266, %v675_v58  ;;  %v677_v26 = vshll.u32 %v2159_v6, %v675_v58 }
  0xba   :  { %v518_v52 = vshrl.u32 %v1933_v21, %v515_v56  ;;  %v351_v6 = vsel %vm349_vm12, %v350_v27, %v2192_v37  ;;  %v520_v35 = vshll.u32 %v1933_v21, %v2173_v33  ;;  %v521_v13 = vshrl.u32 %v1934_v24, %v515_v56 }
  0xbb   :  { %v480_v22 = vxor.u32 2147483648, %v479_v7  ;;  %v678_v5 = vshrl.u32 %v660_v30, %v676_v19  ;;  %v681_v32 = vadd.s32 127, %v680_v57  ;;  %v352_v39 = vadd.s32 %v351_v6, %v347_v23 }
  0xbc   :  { %v507_v38 = vand.u32 8388607, %v500_v16  ;;  %v2223_v46 = vshrl.u32 %v2136_v25, 5  ;;  %v519_v60 = vor.u32 %v518_v52, %v517_v10  ;;  %vm2227_vm13 = vcmp.le.f32.partialorder %v604_v20, 0.7853982 }
  0xbd   :  { %v481_v63 = vsel %vm398_vm4, %v480_v22, %v479_v7  ;;  %v679_v14 = vor.u32 %v678_v5, %v677_v26  ;;  %v682_v29 = vshll.u32 %v681_v32, 23  ;;  %v353_v51 = vadd.s32 536870912, %v352_v39 }
  0xbe   :  { %v484_v34 = vsel %vm2163_vm7, %v2028_v41, %v481_v63  ;;  %v522_v54 = vor.u32 %v521_v13, %v520_v35  ;;  %v524_v55 = vshrl.u32 %v1935_v28, %v515_v56  ;;  %v523_v11 = vshll.u32 %v1934_v24, %v2173_v33 }
  0xbf   :  { %1906 = vcosq.f32 %v484_v34  ;;  %v683_v2 = vor.u32 4788187, %v682_v29  ;;  %v526_v59 = vshll.u32 %v1935_v28, %v2173_v33  ;;  %v527_v25 = vshrl.u32 %v1936_v31, %v515_v56 }
  0xc0   :  { %1908 = vsinq.f32 %v484_v34  ;;  %v530_v48 = vshrl.u32 %v1937_v36, %v515_v56  ;;  %v686_v20 = vcvt.s32.f32 %v679_v14  ;;  %v2238_v37 = vshrl.u32 %v353_v51, 30 }
  0xc1   :  { %v684_v53 = vand.u32 2147483647, %v683_v2  ;;  %v529_v7 = vshll.u32 %v1936_v31, %v2173_v33  ;;  %vm606_vm14 = vcmp.lt.s32.totalorder %v2030_v42, 0  ;;  %v1110_v30 = vand.u32 3, %v2197_v3 }
  0xc2   :  { %v525_v58 = vor.u32 %v524_v55, %v523_v11  ;;  %v528_v22 = vor.u32 %v527_v25, %v526_v59  ;;  %v355_v57 = vshll.u32 %v2238_v37, 30  ;;  %vm535_vm15 = vcmp.lt.s32.totalorder %v2223_v46, 4 }
  0xc3   :  { %v687_v19 = vmul.f32 %v686_v20, %v684_v53  ;;  %v531_v23 = vor.u32 %v530_v48, %v529_v7  ;;  %v691_v26 = vsel %vm606_vm14, %v690_v4, %v2151_v47  ;;  %v508_v27 = vor.u32 8388608, %v507_v38 }
  0xc4   :  { %vm532_vm0 = vcmp.lt.s32.totalorder %v2223_v46, 1  ;;  %v541_v33 = vsel %vm535_vm15, %v528_v22, 920167782  ;;  %v2252_v63 = vsub.s32 %v352_v39, %v355_v57  ;;  %vm534_vm1 = vcmp.lt.s32.totalorder %v2223_v46, 3  ;;  %v1354_v57 = vld [vmem:[%s2662_s3 + $0x18] sm:$0xff] }
  0xc5   :  { %v688_v10 = vxor.u32 2147483648, %v687_v19  ;;  %v540_v5 = vsel %vm532_vm0, %v519_v60, %v522_v54  ;;  %v516_v32 = vshrl.u32 %v1932_v18, %v515_v56  ;;  %vm533_vm2 = vcmp.lt.s32.totalorder %v2223_v46, 2  ;;  %1372 = vperm.xlu1 %1899, %v1354_v57  }
  0xc6   :  { %v542_v47 = vsel %vm534_vm1, %v525_v58, %v541_v33  ;;  %v544_v4 = vsel %vm532_vm0, %v522_v54, %v525_v58  ;;  %vm488_vm3 = vweird.f32 %v2028_v41  ;;  %v358_v34 = vsub.s32 0, %v2252_v63 }
  0xc7   :  { %v689_v52 = vsel %vm606_vm14, %v688_v10, %v687_v19  ;;  %v537_v6 = vsel %vm535_vm15, %v525_v58, 2102212464  ;;  %v545_v56 = vsel %vm535_vm15, %v531_v23, 1326507024  ;;  %v543_v13 = vsel %vm533_vm2, %v540_v5, %v542_v47 }
  0xc8   :  { %v692_v35 = vsel %vm2227_vm13, %v2030_v42, %v689_v52  ;;  %v546_v14 = vsel %vm534_vm1, %v528_v22, %v545_v56  ;;  %v548_v29 = vshll.u32 %v508_v27, 8  ;;  %v1804_v39 = vmin.u32 %v358_v34, %v2252_v63 }
  0xc9   :  { %1910 = vcosq.f32 %v692_v35  ;;  %v536_v38 = vsel %vm532_vm0, %v516_v32, %v519_v60  ;;  %v547_v2 = vsel %vm533_vm2, %v544_v4, %v546_v14  ;;  %v538_v55 = vsel %vm534_vm1, %v522_v54, %v537_v6 }
  0xca   :  { %1912 = vsinq.f32 %v692_v35  ;;  %v2287_v11 = vmul.u32.u64.low %v548_v29, %v547_v2  ;;  %v2288_v59 = vmul.u32.u64.high %v548_v29, %v547_v2, %v2287_v11  ;;  %v360_v53 = vclz %v1804_v39 }
  0xcb   :  { %v2293_v20 = vmul.u32.u64.low %v548_v29, %v543_v13  ;;  %v2294_v7 = vmul.u32.u64.high %v548_v29, %v543_v13, %v2293_v20  ;;  %vm1112_vm4 = vcmp.eq.s32.totalorder %v1110_v30, 0  ;;  %vm1115_vm5 = vcmp.eq.s32.totalorder %v1110_v30, 2 }
  0xcc   :  { %v2283_v51 = vpop.eup %1906  ;;  %vm294_vm6 = vcmp.lt.s32.totalorder %v2034_v44, 0  ;;  %v2301_v54 = vsel %vm2227_vm13, 0, %v691_v26  ;;  %v1805_v22 = vadd.s32 4294967294, %v360_v53  ;;  %v539_v19 = vsel %vm533_vm2, %v536_v38, %v538_v55 }
  0xcd   :  { %v2290_v25 = vpop.eup %1908  ;;  %v496_v48 = vxor.u32 2147483648, %v2283_v51  ;;  %vm1111_vm7 = vcmp.lt.s32.totalorder %v1110_v30, 2  ;;  %v378_v62 = vsub.s32 4, %v2238_v37  ;;  %vm557_vm8 = vc.u32 %v2288_v59, %v2293_v20  ;;  %v1351_v30 = vld [vmem:[%s2662_s3] sm:$0xff] }
  0xce   :  { %v493_v60 = vxor.u32 2147483648, %v2290_v25  ;;  %vm1806_vm9 = vcmp.lt.s32.totalorder %v1805_v22, 0  ;;  %v558_v46 = vadd.s32 1, %v2294_v7  ;;  %v203_v27 = vsub.s32 32, %v2180_v49  ;;  %1357 = vperm.xlu1 %1899, %v1351_v30  }
  0xcf   :  { %v1117_v58 = vsel %vm1115_vm5, %v496_v48, %v2290_v25  ;;  %v1316_v10 = vand.u32 3, %v2301_v54  ;;  %v363_v5 = vsel %vm1806_vm9, 0, %v1805_v22  ;;  %v555_v32 = vmul.u32 %v548_v29, %v539_v19 }
  0xd0   :  { %v1114_v23 = vsel %vm1112_vm4, %v2283_v51, %v493_v60  ;;  %v348_v47 = vadd.s32 %v2191_v0, %v2189_v61  ;;  %v364_v4 = vsub.s32 32, %v363_v5  ;;  %v368_v52 = vsub.s32 4294967266, %v363_v5 }
  0xd1   :  { %v1118_v26 = vsel %vm1111_vm7, %v1114_v23, %v1117_v58  ;;  %v559_v34 = vsel %vm557_vm8, %v558_v46, %v2294_v7  ;;  %vm2332_vm10 = vcmp.le.f32.partialorder %v292_v17, 0.7853982  ;;  %v379_v56 = vsel %vm294_vm6, %v378_v62, %v2238_v37  ;;  %v1470_v17 = vld [vmem:[%s2664_s5 + $0x10] sm:$0xff] }
  0xd2   :  { %v2324_v33 = vsel %vm488_vm3, nan, %v1118_v26  ;;  %v560_v35 = vadd.s32 %v559_v34, %v555_v32  ;;  %v188_v13 = vand.u32 2147483647, %v2026_v40  ;;  %vm696_vm11 = vweird.f32 %v2030_v42  ;;  %1484 = vperm.xlu1 %1899, %v1470_v17   ;;  %v1468_v26 = vld [vmem:[%s2664_s5] sm:$0xff] }
  0xd3   :  { %v365_v61 = vshll.u32 %v2252_v63, %v363_v5  ;;  %v366_v0 = vshrl.u32 %v348_v47, %v364_v4  ;;  %v369_v14 = vadd.s32 127, %v368_v52  ;;  %v206_v29 = vshrl.u32 %v1933_v21, %v203_v27 }
  0xd4   :  { %vm1317_vm12 = vcmp.lt.s32.totalorder %v1316_v10, 2  ;;  %vm1318_vm13 = vcmp.eq.s32.totalorder %v1316_v10, 0  ;;  %vm1321_vm14 = vcmp.eq.s32.totalorder %v1316_v10, 2  ;;  %v561_v37 = vadd.s32 536870912, %v560_v35 }
  0xd5   :  { %v367_v39 = vor.u32 %v366_v0, %v365_v61  ;;  %v370_v38 = vshll.u32 %v369_v14, 23  ;;  %v2348_v2 = vsel %vm2332_vm10, 0, %v379_v56  ;;  %v205_v63 = vshll.u32 %v1932_v18, %v2180_v49 }
  0xd6   :  { %v2352_v55 = vpop.eup %1910  ;;  %v2354_v11 = vshrl.u32 %v561_v37, 30  ;;  %v195_v53 = vand.u32 8388607, %v188_v13  ;;  %v208_v7 = vshll.u32 %v1933_v21, %v2180_v49  ;;  %v209_v58 = vshrl.u32 %v1934_v24, %v203_v27  ;;  %1474 = vperm.xlu1 %1899, %v1468_v26  }
  0xd7   :  { %v2361_v22 = vpop.eup %1912  ;;  %v704_v19 = vxor.u32 2147483648, %v2352_v55  ;;  %v371_v57 = vor.u32 4788187, %v370_v38  ;;  %v207_v23 = vor.u32 %v206_v29, %v205_v63  ;;  %v215_v62 = vshrl.u32 %v1936_v31, %v203_v27  ;;  %v1858_v38 = vld [vmem:[%s2664_s5 + $0x30] sm:$0xff] }
  0xd8   :  { %v701_v46 = vxor.u32 2147483648, %v2361_v22  ;;  %v563_v30 = vshll.u32 %v2354_v11, 30  ;;  %v212_v5 = vshrl.u32 %v1935_v28, %v203_v27  ;;  %v214_v32 = vshll.u32 %v1935_v28, %v2180_v49 }
  0xd9   :  { %v1323_v47 = vsel %vm1321_vm14, %v704_v19, %v2361_v22  ;;  %v372_v4 = vand.u32 2147483647, %v371_v57  ;;  %v374_v52 = vcvt.s32.f32 %v367_v39  ;;  %v218_v34 = vshrl.u32 %v1937_v36, %v203_v27 }
  0xda   :  { %v1320_v56 = vsel %vm1318_vm13, %v2352_v55, %v701_v46  ;;  %v2382_v61 = vsub.s32 %v560_v35, %v563_v30  ;;  %v210_v0 = vor.u32 %v209_v58, %v208_v7  ;;  %v211_v14 = vshll.u32 %v1934_v24, %v2180_v49  ;;  %1604 = vperm.xlu1 %1899, %v1858_v38   ;;  %v1856_v30 = vld [vmem:[%s2664_s5 + $0x20] sm:$0xff] }
  0xdb   :  { %v1324_v29 = vsel %vm1317_vm12, %v1320_v56, %v1323_v47  ;;  %v375_v17 = vmul.f32 %v374_v52, %v372_v4  ;;  %v216_v37 = vor.u32 %v215_v62, %v214_v32  ;;  %v217_v39 = vshll.u32 %v1936_v31, %v2180_v49 }
  0xdc   :  { %v1325_v35 = vsel %vm696_vm11, nan, %v1324_v29  ;;  %v566_v63 = vsub.s32 0, %v2382_v61  ;;  %v204_v7 = vshrl.u32 %v1932_v18, %v203_v27  ;;  %v213_v58 = vor.u32 %v212_v5, %v211_v14 }
  0xdd   :  { %v1344_v10 = vpack.c.bf16 %v1325_v35, %v2324_v33  ;;  %v376_v57 = vxor.u32 2147483648, %v375_v17  ;;  %v196_v26 = vor.u32 8388608, %v195_v53  ;;  %v219_v62 = vor.u32 %v218_v34, %v217_v39 }
  0xde   :  { %vm502_vm15 = vcmp.lt.s32.totalorder %v2036_v45, 0  ;;  %v1812_v49 = vmin.u32 %v566_v63, %v2382_v61  ;;  %vm220_vm0 = vcmp.lt.s32.totalorder %v2133_v15, 1  ;;  %vm221_vm1 = vcmp.lt.s32.totalorder %v2133_v15, 2  ;;  %1594 = vperm.xlu1 %1899, %v1856_v30   ;;  %v1702_v63 = vld [vmem:[%s2666_s7] sm:$0x3] }
  0xdf   :  { %vm223_vm2 = vcmp.lt.s32.totalorder %v2133_v15, 4  ;;  %1409 = vmatprep.subr.bf16.mxu0 %v1344_v10  ;;  %v377_v27 = vsel %vm294_vm6, %v376_v57, %v375_v17  ;;  %vm222_vm4 = vcmp.lt.s32.totalorder %v2133_v15, 3  ;;  %v228_v33 = vsel %vm220_vm0, %v207_v23, %v210_v0 }
  0xe0   :  { %v229_v53 = vsel %vm223_vm2, %v216_v37, 920167782  ;;  %v380_v5 = vsel %vm2332_vm10, %v2034_v44, %v377_v27  ;;  %v568_v32 = vclz %v1812_v49  ;;  %v225_v47 = vsel %vm223_vm2, %v213_v58, 2102212464 }
  0xe1   :  { %v230_v4 = vsel %vm222_vm4, %v213_v58, %v229_v53  ;;  %1914 = vcosq.f32 %v380_v5  ;;  %v232_v34 = vsel %vm220_vm0, %v210_v0, %v213_v58  ;;  %v233_v56 = vsel %vm223_vm2, %v219_v62, 1326507024 }
  0xe2   :  { %v231_v52 = vsel %vm221_vm1, %v228_v33, %v230_v4  ;;  %1916 = vsinq.f32 %v380_v5  ;;  %v1813_v6 = vadd.s32 4294967294, %v568_v32  ;;  %v234_v14 = vsel %vm222_vm4, %v216_v37, %v233_v56  ;;  %1705 = vperm.xlu1 %1899, %v1702_v63  }
  0xe3   :  { %v236_v29 = vshll.u32 %v196_v26, 8  ;;  %v586_v17 = vsub.s32 4, %v2354_v11  ;;  %v224_v39 = vsel %vm220_vm0, %v204_v7, %v207_v23  ;;  %v235_v38 = vsel %vm221_vm1, %v232_v34, %v234_v14 }
  0xe4   :  { %v697_v35 = vadd.s32 3, %v2301_v54  ;;  %vm1814_vm5 = vcmp.lt.s32.totalorder %v1813_v6, 0  ;;  %v226_v37 = vsel %vm222_vm4, %v210_v0, %v225_v47  ;;  %v556_v54 = vadd.s32 %v2293_v20, %v2288_v59 }
  0xe5   :  { %v2438_v58 = vmul.u32.u64.low %v236_v29, %v235_v38  ;;  %v2439_v10 = vmul.u32.u64.high %v236_v29, %v235_v38, %v2438_v58  ;;  %v571_v57 = vsel %vm1814_vm5, 0, %v1813_v6  ;;  %v2448_v27 = vand.u32 3, %v2348_v2 }
  0xe6   :  { %v2441_v26 = vmul.u32.u64.low %v236_v29, %v231_v52  ;;  %v2442_v62 = vmul.u32.u64.high %v236_v29, %v231_v52, %v2441_v26  ;;  %v698_v23 = vand.u32 3, %v697_v35  ;;  %v572_v7 = vsub.s32 32, %v571_v57 }
  0xe7   :  { %v576_v49 = vsub.s32 4294967266, %v571_v57  ;;  %v573_v0 = vshll.u32 %v2382_v61, %v571_v57  ;;  %v587_v33 = vsel %vm502_vm15, %v586_v17, %v2354_v11  ;;  %v227_v53 = vsel %vm221_vm1, %v224_v39, %v226_v37 }
  0xe8   :  { %vm700_vm6 = vcmp.eq.s32.totalorder %v698_v23, 0  ;;  %v574_v30 = vshrl.u32 %v556_v54, %v572_v7  ;;  %vm245_vm7 = vc.u32 %v2439_v10, %v2441_v26  ;;  %vm703_vm8 = vcmp.eq.s32.totalorder %v698_v23, 2 }
  0xe9   :  { %v577_v5 = vadd.s32 127, %v576_v49  ;;  %v246_v59 = vadd.s32 1, %v2442_v62  ;;  %vm699_vm9 = vcmp.lt.s32.totalorder %v698_v23, 2  ;;  %v702_v20 = vsel %vm700_vm6, %v2352_v55, %v701_v46 }
  0xea   :  { %v705_v11 = vsel %vm703_vm8, %v704_v19, %v2361_v22  ;;  %v575_v15 = vor.u32 %v574_v30, %v573_v0  ;;  %v243_v32 = vmul.u32 %v236_v29, %v227_v53  ;;  %v84_v34 = vand.u32 2147483647, %v2032_v43 }
  0xeb   :  { %v578_v61 = vshll.u32 %v577_v5, 23  ;;  %v706_v47 = vsel %vm699_vm9, %v702_v20, %v705_v11  ;;  %v247_v4 = vsel %vm245_vm7, %v246_v59, %v2442_v62  ;;  %v99_v56 = vsub.s32 32, %v2183_v50 }
  0xec   :  { %v2468_v52 = vsel %vm696_vm11, nan, %v706_v47  ;;  %v248_v46 = vadd.s32 %v247_v4, %v243_v32  ;;  %vm2474_vm10 = vcmp.le.f32.partialorder %v500_v16, 0.7853982  ;;  %vm1009_vm12 = vcmp.eq.s32.totalorder %v2448_v27, 0 }
  0xed   :  { %v579_v6 = vor.u32 4788187, %v578_v61  ;;  %vm1012_vm13 = vcmp.eq.s32.totalorder %v2448_v27, 2  ;;  %v582_v19 = vcvt.s32.f32 %v575_v15  ;;  %v589_v14 = vsel %vm2474_vm10, 0, %v587_v33 }
  0xee   :  { %v2480_v22 = vpop.eup %1914  ;;  %vm1008_vm11 = vcmp.lt.s32.totalorder %v2448_v27, 2  ;;  %v249_v29 = vadd.s32 536870912, %v248_v46  ;;  %v91_v16 = vand.u32 8388607, %v84_v34  ;;  %v101_v39 = vshll.u32 %v1932_v18, %v2183_v50 }
  0xef   :  { %v580_v42 = vand.u32 2147483647, %v579_v6  ;;  %v2485_v17 = vpop.eup %1916  ;;  %v102_v38 = vshrl.u32 %v1933_v21, %v99_v56  ;;  %v105_v35 = vshrl.u32 %v1934_v24, %v99_v56  ;;  %v392_v37 = vxor.u32 2147483648, %v2480_v22 }
  0xf0   :  { %v389_v63 = vxor.u32 2147483648, %v2485_v17  ;;  %v2495_v57 = vshrl.u32 %v249_v29, 30  ;;  %v104_v62 = vshll.u32 %v1933_v21, %v2183_v50  ;;  %v108_v23 = vshrl.u32 %v1935_v28, %v99_v56 }
  0xf1   :  { %v583_v58 = vmul.f32 %v582_v19, %v580_v42  ;;  %v111_v54 = vshrl.u32 %v1936_v31, %v99_v56  ;;  %v114_v7 = vshrl.u32 %v1937_v36, %v99_v56  ;;  %v97_v33 = vshrl.u32 %v2129_v8, 5 }
  0xf2   :  { %v251_v0 = vshll.u32 %v2495_v57, 30  ;;  %v107_v53 = vshll.u32 %v1934_v24, %v2183_v50  ;;  %v103_v30 = vor.u32 %v102_v38, %v101_v39  ;;  %v106_v5 = vor.u32 %v105_v35, %v104_v62 }
  0xf3   :  { %v584_v49 = vxor.u32 2147483648, %v583_v58  ;;  %v110_v59 = vshll.u32 %v1935_v28, %v2183_v50  ;;  %v113_v21 = vshll.u32 %v1936_v31, %v2183_v50  ;;  %v1011_v36 = vsel %vm1009_vm12, %v2480_v22, %v389_v63 }
  0xf4   :  { %v1014_v24 = vsel %vm1012_vm13, %v392_v37, %v2485_v17  ;;  %v2522_v8 = vsub.s32 %v248_v46, %v251_v0  ;;  %v109_v31 = vor.u32 %v108_v23, %v107_v53  ;;  %v2527_v15 = vand.u32 3, %v589_v14 }
  0xf5   :  { %v585_v20 = vsel %vm502_vm15, %v584_v49, %v583_v58  ;;  %v112_v50 = vor.u32 %v111_v54, %v110_v59  ;;  %v115_v11 = vor.u32 %v114_v7, %v113_v21  ;;  %v92_v32 = vor.u32 8388608, %v91_v16 }
  0xf6   :  { %v588_v28 = vsel %vm2474_vm10, %v2036_v45, %v585_v20  ;;  %v254_v61 = vsub.s32 0, %v2522_v8  ;;  %v1015_v47 = vsel %vm1008_vm11, %v1011_v36, %v1014_v24  ;;  %v100_v4 = vshrl.u32 %v1932_v18, %v99_v56 }
  0xf7   :  { %1918 = vcosq.f32 %v588_v28  ;;  %vm116_vm14 = vcmp.lt.s32.totalorder %v97_v33, 1  ;;  %vm118_vm15 = vcmp.lt.s32.totalorder %v97_v33, 3  ;;  %vm119_vm0 = vcmp.lt.s32.totalorder %v97_v33, 4 }
  0xf8   :  { %1920 = vsinq.f32 %v588_v28  ;;  %v1800_v6 = vmin.u32 %v254_v61, %v2522_v8  ;;  %v124_v46 = vsel %vm116_vm14, %v103_v30, %v106_v5  ;;  %v121_v55 = vsel %vm119_vm0, %v109_v31, 2102212464 }
  0xf9   :  { %v125_v42 = vsel %vm119_vm0, %v112_v50, 920167782  ;;  %v128_v19 = vsel %vm116_vm14, %v106_v5, %v109_v31  ;;  %v129_v29 = vsel %vm119_vm0, %v115_v11, 1326507024  ;;  %vm117_vm1 = vcmp.lt.s32.totalorder %v97_v33, 2 }
  0xfa   :  { %v256_v39 = vclz %v1800_v6  ;;  %v126_v16 = vsel %vm118_vm15, %v109_v31, %v125_v42  ;;  %v130_v38 = vsel %vm118_vm15, %v112_v50, %v129_v29  ;;  %v120_v27 = vsel %vm116_vm14, %v100_v4, %v103_v30 }
  0xfb   :  { %v127_v35 = vsel %vm117_vm1, %v124_v46, %v126_v16  ;;  %v131_v18 = vsel %vm117_vm1, %v128_v19, %v130_v38  ;;  %v132_v56 = vshll.u32 %v92_v32, 8  ;;  %v122_v62 = vsel %vm118_vm15, %v106_v5, %v121_v55 }
  0xfc   :  { %v1801_v58 = vadd.s32 4294967294, %v256_v39  ;;  %v593_v23 = vadd.s32 3, %v589_v14  ;;  %v489_v54 = vadd.s32 3, %v2197_v3  ;;  %vm384_vm2 = vweird.f32 %v2034_v44 }
  0xfd   :  { %v2540_v7 = vmul.u32.u64.low %v132_v56, %v131_v18  ;;  %v2541_v49 = vmul.u32.u64.high %v132_v56, %v131_v18, %v2540_v7  ;;  %v2543_v0 = vmul.u32.u64.low %v132_v56, %v127_v35  ;;  %v2544_v53 = vmul.u32.u64.high %v132_v56, %v127_v35, %v2543_v0 }
  0xfe   :  { %vm1215_vm4 = vcmp.eq.s32.totalorder %v2527_v15, 0  ;;  %vm1802_vm5 = vcmp.lt.s32.totalorder %v1801_v58, 0  ;;  %vm1214_vm6 = vcmp.lt.s32.totalorder %v2527_v15, 2  ;;  %vm1218_vm7 = vcmp.eq.s32.totalorder %v2527_v15, 2 }
  0xff   :  { %v259_v30 = vsel %vm1802_vm5, 0, %v1801_v58  ;;  %v123_v14 = vsel %vm117_vm1, %v120_v27, %v122_v62  ;;  %v594_v3 = vand.u32 3, %v593_v23  ;;  %vm592_vm8 = vweird.f32 %v2036_v45 }
 0x100   :  { %v1016_v5 = vsel %vm384_vm2, nan, %v1015_v47  ;;  %v244_v59 = vadd.s32 %v2441_v26, %v2439_v10  ;;  %v260_v21 = vsub.s32 32, %v259_v30  ;;  %v264_v20 = vsub.s32 4294967266, %v259_v30 }
 0x101   :  { %vm141_vm9 = vc.u32 %v2541_v49, %v2543_v0  ;;  %v142_v36 = vadd.s32 1, %v2544_v53  ;;  %v490_v24 = vand.u32 3, %v489_v54  ;;  %v385_v33 = vadd.s32 3, %v2348_v2 }
 0x102   :  { %v261_v28 = vshll.u32 %v2522_v8, %v259_v30  ;;  %v262_v31 = vshrl.u32 %v244_v59, %v260_v21  ;;  %v265_v50 = vadd.s32 127, %v264_v20  ;;  %v139_v11 = vmul.u32 %v132_v56, %v123_v14 }
 0x103   :  { %v143_v32 = vsel %vm141_vm9, %v142_v36, %v2544_v53  ;;  %vm595_vm10 = vcmp.lt.s32.totalorder %v594_v3, 2  ;;  %vm596_vm12 = vcmp.eq.s32.totalorder %v594_v3, 0  ;;  %vm599_vm13 = vcmp.eq.s32.totalorder %v594_v3, 2 }
 0x104   :  { %v1919_v61 = vpop.eup %1918  ;;  %v263_v47 = vor.u32 %v262_v31, %v261_v28  ;;  %v266_v4 = vshll.u32 %v265_v50, 23  ;;  %v144_v6 = vadd.s32 %v143_v32, %v139_v11  ;;  %vm492_vm11 = vcmp.eq.s32.totalorder %v490_v24, 0 }
 0x105   :  { %v1921_v10 = vpop.eup %1920  ;;  %v600_v26 = vxor.u32 2147483648, %v1919_v61  ;;  %vm495_vm14 = vcmp.eq.s32.totalorder %v490_v24, 2  ;;  %v386_v2 = vand.u32 3, %v385_v33  ;;  %v494_v38 = vsel %vm492_vm11, %v2283_v51, %v493_v60 }
 0x106   :  { %v597_v46 = vxor.u32 2147483648, %v1921_v10  ;;  %v267_v55 = vor.u32 4788187, %v266_v4  ;;  %v270_v42 = vcvt.s32.f32 %v263_v47  ;;  %v145_v19 = vadd.s32 536870912, %v144_v6 }
 0x107   :  { %v1220_v8 = vsel %vm1218_vm7, %v600_v26, %v1921_v10  ;;  %v601_v16 = vsel %vm599_vm13, %v600_v26, %v1921_v10  ;;  %v497_v62 = vsel %vm495_vm14, %v496_v48, %v2290_v25  ;;  %vm491_vm15 = vcmp.lt.s32.totalorder %v490_v24, 2 }
 0x108   :  { %v1217_v29 = vsel %vm1215_vm4, %v1919_v61, %v597_v46  ;;  %v598_v39 = vsel %vm596_vm12, %v1919_v61, %v597_v46  ;;  %v268_v35 = vand.u32 2147483647, %v267_v55  ;;  %v2574_v18 = vshrl.u32 %v145_v19, 30 }
 0x109   :  { %v1221_v27 = vsel %vm1214_vm6, %v1217_v29, %v1220_v8  ;;  %v2577_v56 = vsel %vm595_vm10, %v598_v39, %v601_v16  ;;  %v498_v15 = vsel %vm491_vm15, %v494_v38, %v497_v62  ;;  %vm388_vm0 = vcmp.eq.s32.totalorder %v386_v2, 0 }
 0x10a   :  { %v1222_v58 = vsel %vm592_vm8, nan, %v1221_v27  ;;  %v271_v54 = vmul.f32 %v270_v42, %v268_v35  ;;  %v147_v60 = vshll.u32 %v2574_v18, 30  ;;  %v2587_v30 = vsel %vm488_vm3, nan, %v498_v15 }
 0x10b   :  { %v1343_v23 = vpack.c.bf16 %v1222_v58, %v1016_v5  ;;  %vm391_vm1 = vcmp.eq.s32.totalorder %v386_v2, 2  ;;  %vm190_vm4 = vcmp.lt.s32.totalorder %v2026_v40, 0  ;;  %v390_v51 = vsel %vm388_vm0, %v2480_v22, %v389_v63 }
 0x10c   :  { %v272_v7 = vxor.u32 2147483648, %v271_v54  ;;  %v148_v53 = vsub.s32 %v144_v6, %v147_v60  ;;  %v393_v25 = vsel %vm391_vm1, %v392_v37, %v2485_v17  ;;  %vm189_vm5 = vcmp.le.f32.partialorder %v188_v13, 0.7853982 }
 0x10d   :  { %1410 = vmatpush1.bf16.msra.mxu0 %v1343_v23  ;;  %vm387_vm6 = vcmp.lt.s32.totalorder %v386_v2, 2  ;;  %v274_v59 = vsub.s32 4, %v2495_v57  ;;  %v140_v13 = vadd.s32 %v2543_v0, %v2541_v49  ;;  %vm280_vm12 = vweird.f32 %v2026_v40 }
 0x10e   :  { %v273_v48 = vsel %vm190_vm4, %v272_v7, %v271_v54  ;;  %v150_v14 = vsub.s32 0, %v148_v53  ;;  %v2599_v3 = vsel %vm387_vm6, %v390_v51, %v393_v25  ;;  %vm86_vm13 = vcmp.lt.s32.totalorder %v2032_v43, 0 }
 0x10f   :  { %v276_v41 = vsel %vm189_vm5, %v2026_v40, %v273_v48  ;;  %v275_v22 = vsel %vm190_vm4, %v274_v59, %v2495_v57  ;;  %v170_v42 = vsub.s32 4, %v2574_v18  ;;  %vm85_vm11 = vcmp.le.f32.partialorder %v84_v34, 0.7853982  ;;  %v1901_v40 = vld [vmem:[%s2665_s2 + $0x8] sm:$0xff]  }
 0x110   :  { %1922 = vcosq.f32 %v276_v41  ;;  %v1796_v5 = vmin.u32 %v150_v14, %v148_v53  ;;  %v277_v37 = vsel %vm189_vm5, 0, %v275_v22  ;;  %v603_v15 = vsel %vm592_vm8, nan, %v2577_v56 }
 0x111   :  { %1924 = vsinq.f32 %v276_v41  ;;  %v904_v31 = vand.u32 3, %v277_v37  ;;  %v171_v39 = vsel %vm86_vm13, %v170_v42, %v2574_v18  ;;  %v281_v16 = vadd.s32 3, %v277_v37 }
 0x112   :  { %v152_v63 = vclz %v1796_v5  ;;  %v173_v38 = vsel %vm85_vm11, 0, %v171_v39  ;;  %vm1385_vm8 = vcmask 457728  }
 0x113   :  { %vm909_vm7 = vcmp.eq.s32.totalorder %v904_v31, 2  ;;  %vm906_vm9 = vcmp.eq.s32.totalorder %v904_v31, 0  ;;  %vm905_vm10 = vcmp.lt.s32.totalorder %v904_v31, 2  ;;  %v282_v27 = vand.u32 3, %v281_v16  ;;  %v1902_v16 = vld [vmem:[%s2667_s4] sm:$0xff]  }
 0x114   :  { %v1797_v21 = vadd.s32 4294967294, %v152_v63  ;;  %v801_v35 = vand.u32 3, %v173_v38 }
 0x115   :  { %vm284_vm14 = vcmp.eq.s32.totalorder %v282_v27, 0  ;;  %vm287_vm15 = vcmp.eq.s32.totalorder %v282_v27, 2  ;;  %vm283_vm0 = vcmp.lt.s32.totalorder %v282_v27, 2 }
 0x116   :  { %vm1798_vm3 = vcmp.lt.s32.totalorder %v1797_v21, 0  ;;  %vm806_vm1 = vcmp.eq.s32.totalorder %v801_v35, 2  ;;  %vm803_vm5 = vcmp.eq.s32.totalorder %v801_v35, 0 }
 0x117   :  { %v155_v17 = vsel %vm1798_vm3, 0, %v1797_v21  ;;  %vm802_vm3 = vcmp.lt.s32.totalorder %v801_v35, 2  ;;  %v395_v21 = vsel %vm384_vm2, nan, %v2599_v3  ;;  %vm1502_vm2 = vcmask 261120  }
 0x118   :  { %v156_v20 = vsub.s32 32, %v155_v17  ;;  %v160_v36 = vsub.s32 4294967266, %v155_v17  ;;  %v157_v24 = vshll.u32 %v148_v53, %v155_v17  ;;  %v1368_v17 = vpop.permute.xlu0 %1367 }
 0x11a   :  { %v158_v33 = vshrl.u32 %v140_v13, %v156_v20  ;;  %v161_v28 = vadd.s32 127, %v160_v36 }
 0x11c   :  { %v159_v50 = vor.u32 %v158_v33, %v157_v24  ;;  %v162_v11 = vshll.u32 %v161_v28, 23  ;;  %v1363_v24 = vpop.permute.xlu0 %1362 }
 0x11d   :  { %v1923_v61 = vpop.eup %1922 }
 0x11e   :  { %v1925_v32 = vpop.eup %1924  ;;  %v288_v10 = vxor.u32 2147483648, %v1923_v61  ;;  %v163_v26 = vor.u32 4788187, %v162_v11  ;;  %v166_v6 = vcvt.s32.f32 %v159_v50 }
 0x11f   :  { %v285_v47 = vxor.u32 2147483648, %v1925_v32 }
 0x120   :  { %v911_v57 = vsel %vm909_vm7, %v288_v10, %v1925_v32  ;;  %v164_v4 = vand.u32 2147483647, %v163_v26  ;;  %v289_v23 = vsel %vm287_vm15, %v288_v10, %v1925_v32  ;;  %v1490_v35 = vpop.permute.xlu0 %1489 }
 0x121   :  { %v908_v49 = vsel %vm906_vm9, %v1923_v61, %v285_v47  ;;  %v286_v62 = vsel %vm284_vm14, %v1923_v61, %v285_v47  ;;  %vm176_vm9 = vweird.f32 %v2032_v43 }
 0x122   :  { %v912_v0 = vsel %vm905_vm10, %v908_v49, %v911_v57  ;;  %v167_v46 = vmul.f32 %v166_v6, %v164_v4  ;;  %v290_v7 = vsel %vm283_vm0, %v286_v62, %v289_v23  ;;  %vm1776_vm10 = vcmask 1040384  }
 0x123   :  { %v913_v2 = vsel %vm280_vm12, nan, %v912_v0  ;;  %v291_v45 = vsel %vm280_vm12, nan, %v290_v7 }
 0x124   :  { %v1342_v8 = vpack.c.bf16 %v913_v2, %v2468_v52  ;;  %v168_v55 = vxor.u32 2147483648, %v167_v46  ;;  %v177_v52 = vadd.s32 3, %v173_v38  ;;  %v1340_v59 = vpack.c.bf16 %v2587_v30, %v291_v45  ;;  %v1903_v38 = vld [vmem:[%s2667_s4 + $0x8] sm:$0xff]  }
 0x126   :  { %1411 = vmatprep.subr.bf16.mxu0 %v1342_v8  ;;  %v169_v19 = vsel %vm86_vm13, %v168_v55, %v167_v46  ;;  %v178_v58 = vand.u32 3, %v177_v52 }
 0x127   :  { %v172_v29 = vsel %vm85_vm11, %v2032_v43, %v169_v19  ;;  %v1900_v43 = vld [vmem:[%s2665_s2] sm:$0xff]  }
 0x128   :  { %1926 = vcosq.f32 %v172_v29  ;;  %vm183_vm4 = vcmp.eq.s32.totalorder %v178_v58, 2  ;;  %vm180_vm6 = vcmp.eq.s32.totalorder %v178_v58, 0  ;;  %vm179_vm7 = vcmp.lt.s32.totalorder %v178_v58, 2 }
 0x129   :  { %1928 = vsinq.f32 %v172_v29 }
 0x135   :  { %v1927_v54 = vpop.eup %1926 }
 0x136   :  { %v1929_v60 = vpop.eup %1928  ;;  %v184_v34 = vxor.u32 2147483648, %v1927_v54 }
 0x137   :  { %v181_v18 = vxor.u32 2147483648, %v1929_v60 }
 0x138   :  { %v808_v53 = vsel %vm806_vm1, %v184_v34, %v1929_v60  ;;  %v185_v51 = vsel %vm183_vm4, %v184_v34, %v1929_v60  ;;  %v1480_v60 = vpop.permute.xlu0 %1479 }
 0x139   :  { %v805_v25 = vsel %vm803_vm5, %v1927_v54, %v181_v18  ;;  %v182_v48 = vsel %vm180_vm6, %v1927_v54, %v181_v18 }
 0x13a   :  { %v809_v14 = vsel %vm802_vm3, %v805_v25, %v808_v53  ;;  %v186_v56 = vsel %vm179_vm7, %v182_v48, %v185_v51 }
 0x13b   :  { %v810_v41 = vsel %vm176_vm9, nan, %v809_v14  ;;  %v187_v63 = vsel %vm176_vm9, nan, %v186_v56 }
 0x13c   :  { %v1341_v5 = vpack.c.bf16 %v810_v41, %v603_v15  ;;  %v1339_v22 = vpack.c.bf16 %v395_v21, %v187_v63 }
 0x13e   :  { %1412 = vmatpush1.bf16.msra.mxu0 %v1341_v5 }
 0x13f   :  { %1413 = vmatprep.subr.bf16.mxu0 %v1340_v59 }
 0x140   :  { %v1373_v13 = vpop.permute.xlu1 %1372 }
 0x142   :  { %1414 = vmatpush1.bf16.msra.mxu0 %v1339_v22 }
 0x145   :  { %1846 = vmatmul.mubr.msk.bf16.vlgmr.msra.gmra.mxu0 %vm1385_vm8, %v1900_v43 }
 0x146   :  { %1441 = vmatprep.mubr.bf16.mxu0 %v1930_v1 }
 0x149   :  { %v1358_v11 = vpop.permute.xlu1 %1357 }
 0x14d   :  { %1847 = vmatmul.mubr.msk.bf16.gmra.mxu0 %vm1385_vm8, %v1901_v40  ;;  %v1485_v62 = vpop.permute.xlu1 %1484 }
 0x14e   :  { %1743 = vmatprep.mubr.bf16.mxu0 %v1930_v1 }
 0x151   :  { %v1475_v7 = vpop.permute.xlu1 %1474 }
 0x205   :  { %v1433_v44 = vpop.f32.mrf.mxu0 }
 0x206   :  { %v1434_v0 = vadd.f32 %v1433_v44, %v1358_v11 }
 0x207   :  { %v1435_v30 = vpop.f32.mrf.mxu0 }
 0x208   :  { %v1436_v10 = vadd.f32 %v1435_v30, %v1358_v11  ;;  %v1452_v29 = vmax.f32 %v1434_v0, 0.0  ;;  %v1904_v11 = vld [vmem:[%s2667_s4 + $0x10] sm:$0xff]  }
 0x209   :  { %v1437_v3 = vpop.f32.mrf.mxu0 }
 0x20a   :  { %v1438_v47 = vadd.f32 %v1437_v3, %v1363_v24  ;;  %v1453_v2 = vmax.f32 %v1436_v10, 0.0 }
 0x20b   :  { %v1439_v37 = vpop.f32.mrf.mxu0 }
 0x20c   :  { %v1440_v28 = vadd.f32 %v1439_v37, %v1363_v24  ;;  %v1454_v55 = vmax.f32 %v1438_v47, 0.0 }
 0x20d   :  { %v1443_v20 = vpop.f32.mrf.mxu0 }
 0x20e   :  { %v1444_v61 = vadd.f32 %v1443_v20, %v1368_v17  ;;  %v1455_v4 = vmax.f32 %v1440_v28, 0.0  ;;  %v1464_v39 = vpack.c.bf16 %v1454_v55, %v1452_v29 }
 0x20f   :  { %v1445_v36 = vpop.f32.mrf.mxu0 }
 0x210   :  { %v1446_v31 = vadd.f32 %v1445_v36, %v1368_v17  ;;  %v1456_v46 = vmax.f32 %v1444_v61, 0.0  ;;  %v1465_v19 = vpack.c.bf16 %v1455_v4, %v1453_v2  ;;  %v1905_v61 = vld [vmem:[%s2667_s4 + $0x18] sm:$0xff]  }
 0x211   :  { %v1447_v33 = vpop.f32.mrf.mxu0 }
 0x212   :  { %v1448_v50 = vadd.f32 %v1447_v33, %v1373_v13  ;;  %v1457_v6 = vmax.f32 %v1446_v31, 0.0 }
 0x213   :  { %v1449_v32 = vpop.f32.mrf.mxu0 }
 0x214   :  { %v1450_v26 = vadd.f32 %v1449_v32, %v1373_v13  ;;  %v1458_v57 = vmax.f32 %v1448_v50, 0.0 }
 0x216   :  { %v1459_v49 = vmax.f32 %v1450_v26, 0.0  ;;  %v1466_v42 = vpack.c.bf16 %v1458_v57, %v1456_v46  ;;  %v1610_v26 = vpop.permute.xlu0 %1609 }
 0x218   :  { %v1467_v8 = vpack.c.bf16 %v1459_v49, %v1457_v6 }
 0x21a   :  { %1521 = vmatprep.subr.bf16.mxu1 %v1467_v8 }
 0x21b   :  { %1522 = vmatpush1.bf16.msra.mxu1 %v1466_v42 }
 0x21c   :  { %1523 = vmatprep.subr.bf16.mxu1 %v1465_v19 }
 0x21f   :  { %1524 = vmatpush1.bf16.msra.mxu1 %v1464_v39 }
 0x222   :  { %1850 = vmatmul.mubr.msk.bf16.vlgmr.msra.gmra.mxu1 %vm1502_vm2, %v1902_v16 }
 0x223   :  { %1551 = vmatprep.mubr.bf16.mxu1 %v1930_v1 }
 0x22a   :  { %1851 = vmatmul.mubr.msk.bf16.gmra.mxu1 %vm1502_vm2, %v1903_v38 }
 0x22b   :  { %1660 = vmatprep.mubr.bf16.mxu1 %v1930_v1 }
 0x2e2   :  { %v1543_v27 = vpop.f32.mrf.mxu1 }
 0x2e3   :  { %v1544_v63 = vadd.f32 %v1543_v27, %v1475_v7 }
 0x2e4   :  { %v1545_v52 = vpop.f32.mrf.mxu1 }
 0x2e5   :  { %v1546_v25 = vadd.f32 %v1545_v52, %v1475_v7  ;;  %v1562_v37 = vadd.f32 %v1544_v63, %v1452_v29 }
 0x2e6   :  { %v1547_v58 = vpop.f32.mrf.mxu1 }
 0x2e7   :  { %v1548_v14 = vadd.f32 %v1547_v58, %v1480_v60  ;;  %v1563_v22 = vadd.f32 %v1546_v25, %v1453_v2  ;;  %v1570_v31 = vmax.f32 %v1562_v37, 0.0 }
 0x2e8   :  { %v1549_v23 = vpop.f32.mrf.mxu1 }
 0x2e9   :  { %v1550_v15 = vadd.f32 %v1549_v23, %v1480_v60  ;;  %v1564_v40 = vadd.f32 %v1548_v14, %v1454_v55  ;;  %v1571_v20 = vmax.f32 %v1563_v22, 0.0 }
 0x2ea   :  { %v1553_v54 = vpop.f32.mrf.mxu1 }
 0x2eb   :  { %v1554_v53 = vadd.f32 %v1553_v54, %v1485_v62  ;;  %v1565_v56 = vadd.f32 %v1550_v15, %v1455_v4  ;;  %v1572_v24 = vmax.f32 %v1564_v40, 0.0 }
 0x2ec   :  { %v1555_v34 = vpop.f32.mrf.mxu1 }
 0x2ed   :  { %v1556_v18 = vadd.f32 %v1555_v34, %v1485_v62  ;;  %v1566_v21 = vadd.f32 %v1554_v53, %v1456_v46  ;;  %v1573_v30 = vmax.f32 %v1565_v56, 0.0  ;;  %v1583_v50 = vpack.c.bf16 %v1572_v24, %v1570_v31 }
 0x2ee   :  { %v1557_v51 = vpop.f32.mrf.mxu1 }
 0x2ef   :  { %v1558_v48 = vadd.f32 %v1557_v51, %v1490_v35  ;;  %v1567_v41 = vadd.f32 %v1556_v18, %v1457_v6  ;;  %v1574_v13 = vmax.f32 %v1566_v21, 0.0  ;;  %v1584_v28 = vpack.c.bf16 %v1573_v30, %v1571_v20 }
 0x2f0   :  { %v1559_v45 = vpop.f32.mrf.mxu1 }
 0x2f1   :  { %v1568_v5 = vadd.f32 %v1558_v48, %v1458_v57  ;;  %v1560_v59 = vadd.f32 %v1559_v45, %v1490_v35  ;;  %v1575_v3 = vmax.f32 %v1567_v41, 0.0  ;;  %v1605_v57 = vpop.permute.xlu1 %1604 }
 0x2f3   :  { %v1569_v43 = vadd.f32 %v1560_v59, %v1459_v49  ;;  %v1576_v44 = vmax.f32 %v1568_v5, 0.0  ;;  %v1600_v49 = vpop.permute.xlu0 %1599  ;;  %v1697_v5 = vld [vmem:[%s2668_s6] sm:$0x1]  ;;  %v1754_v59 = vrot.slane %v2002_v12, 1 }
 0x2f5   :  { %v1577_v17 = vmax.f32 %v1569_v43, 0.0  ;;  %v1585_v33 = vpack.c.bf16 %v1576_v44, %v1574_v13  ;;  %v1595_v8 = vpop.permute.xlu1 %1594  ;;  %v1755_v43 = vrot.slane %v1999_v9, 1 }
 0x2f7   :  { %v1586_v36 = vpack.c.bf16 %v1577_v17, %v1575_v3 }
 0x2f9   :  { %1640 = vmatprep.subr.bf16.mxu1 %v1586_v36  ;;  %v1706_v63 = vpop.permute.xlu1 %1705 }
 0x2fa   :  { %1641 = vmatpush1.bf16.msra.mxu1 %v1585_v33 }
 0x2fb   :  { %1642 = vmatprep.subr.bf16.mxu1 %v1584_v28 }
 0x2fe   :  { %1643 = vmatpush1.bf16.msra.mxu1 %v1583_v50 }
 0x301   :  { %1862 = vmatmul.mubr.msk.bf16.vlgmr.msra.gmra.mxu1 %vm1502_vm2, %v1904_v11 }
 0x302   :  { %1670 = vmatprep.mubr.bf16.mxu1 %v1930_v1 }
 0x309   :  { %1863 = vmatmul.mubr.msk.bf16.gmra.mxu1 %vm1502_vm2, %v1905_v61 }
 0x3c1   :  { %v1662_v32 = vpop.f32.mrf.mxu1 }
 0x3c2   :  { %v1663_v35 = vadd.f32 %v1662_v32, %v1595_v8 }
 0x3c3   :  { %v1664_v10 = vpop.f32.mrf.mxu1 }
 0x3c4   :  { %v1665_v42 = vadd.f32 %v1664_v10, %v1595_v8  ;;  %v1681_v7 = vadd.f32 %v1663_v35, %v1570_v31 }
 0x3c5   :  { %v1666_v47 = vpop.f32.mrf.mxu1 }
 0x3c6   :  { %v1667_v29 = vadd.f32 %v1666_v47, %v1600_v49  ;;  %v1682_v62 = vadd.f32 %v1665_v42, %v1571_v20  ;;  %v1689_v56 = vmax.f32 %v1681_v7, 0.0 }
 0x3c7   :  { %v1668_v4 = vpop.f32.mrf.mxu1 }
 0x3c8   :  { %v1669_v46 = vadd.f32 %v1668_v4, %v1600_v49  ;;  %v1683_v54 = vadd.f32 %v1667_v29, %v1572_v24  ;;  %v1690_v51 = vmax.f32 %v1682_v62, 0.0 }
 0x3c9   :  { %v1672_v6 = vpop.f32.mrf.mxu1 }
 0x3ca   :  { %v1673_v55 = vadd.f32 %v1672_v6, %v1605_v57  ;;  %v1684_v16 = vadd.f32 %v1669_v46, %v1573_v30  ;;  %v1691_v48 = vmax.f32 %v1683_v54, 0.0 }
 0x3cb   :  { %v1674_v0 = vpop.f32.mrf.mxu1 }
 0x3cc   :  { %v1675_v2 = vadd.f32 %v1674_v0, %v1605_v57  ;;  %v1685_v58 = vadd.f32 %v1673_v55, %v1574_v13  ;;  %v1692_v34 = vmax.f32 %v1684_v16, 0.0  ;;  %v1698_v41 = vpack.c.bf16 %v1691_v48, %v1689_v56 }
 0x3cd   :  { %v1676_v1 = vpop.f32.mrf.mxu1 }
 0x3ce   :  { %v1677_v19 = vadd.f32 %v1676_v1, %v1610_v26  ;;  %v1686_v38 = vadd.f32 %v1675_v2, %v1575_v3  ;;  %v1693_v53 = vmax.f32 %v1685_v58, 0.0  ;;  %v1699_v45 = vpack.c.bf16 %v1692_v34, %v1690_v51 }
 0x3cf   :  { %v1678_v39 = vpop.f32.mrf.mxu1 }
 0x3d0   :  { %v1687_v27 = vadd.f32 %v1677_v19, %v1576_v44  ;;  %v1679_v52 = vadd.f32 %v1678_v39, %v1610_v26  ;;  %v1694_v15 = vmax.f32 %v1686_v38, 0.0 }
 0x3d2   :  { %v1688_v23 = vadd.f32 %v1679_v52, %v1577_v17  ;;  %v1695_v60 = vmax.f32 %v1687_v27, 0.0 }
 0x3d4   :  { %v1696_v18 = vmax.f32 %v1688_v23, 0.0  ;;  %v1700_v14 = vpack.c.bf16 %v1695_v60, %v1693_v53 }
 0x3d6   :  { %v1701_v25 = vpack.c.bf16 %v1696_v18, %v1694_v15 }
 0x3d8   :  { %1723 = vmatprep.subr.bf16.mxu0 %v1701_v25 }
 0x3d9   :  { %1724 = vmatpush1.bf16.msra.mxu0 %v1700_v14 }
 0x3da   :  { %1725 = vmatprep.subr.bf16.mxu0 %v1699_v45 }
 0x3dd   :  { %1726 = vmatpush1.bf16.msra.mxu0 %v1698_v41 }
 0x3e0   :  { %1864 = vmatmul.mubr.msk.bf16.vlgmr.msra.gmra.mxu0 %vm1502_vm2, %v1697_v5 }
 0x4a0   :  { %v1745_v21 = vpop.f32.mrf.mxu0 }
 0x4a1   :  { %v1746_v22 = vadd.f32 %v1745_v21, %v1706_v63 }
 0x4a2   :  { %v1747_v40 = vpop.f32.mrf.mxu0 }
 0x4a3   :  { %v1758_v44 = vmul.f32 %v1754_v59, %v1746_v22  ;;  %v1748_v30 = vadd.f32 %v1747_v40, %v1706_v63 }
 0x4a4   :  { %v1749_v3 = vpop.f32.mrf.mxu0 }
 0x4a5   :  { %v1762_v17 = vrot.slane %v1758_v44, 1  ;;  %v1759_v37 = vmul.f32 %v1755_v43, %v1748_v30 }
 0x4a6   :  { %v1750_v13 = vpop.f32.mrf.mxu0 }
 0x4a7   :  { %v1768_v20 = vadd.f32 %v1762_v17, %v1746_v22  ;;  %v1763_v36 = vrot.slane %v1759_v37, 1  ;;  %v1766_v28 = vsub.f32 %v1746_v22, %v1762_v17 }
 0x4a9   :  { %v1772_v24 = vrot.slane %v1768_v20, 7  ;;  %v1769_v33 = vadd.f32 %v1763_v36, %v1748_v30  ;;  %v1767_v31 = vsub.f32 %v1748_v30, %v1763_v36 }
 0x4ab   :  { %v1773_v12 = vrot.slane %v1769_v33, 7  ;;  %v1777_v50 = vsel %vm1776_vm10, %v1766_v28, %v1772_v24 }
 0x4ad   :  { %v1778_v11 = vsel %vm1776_vm10, %v1767_v31, %v1773_v12 }
 0x4ae   :  { %v1781_v61 = vcombine.low %v1777_v50, %v1778_v11 }
 0x4b0   :  { %1865 = vst.sshfl [vmem:[%s2669_s8] sm:$0x33 pattern:$0x76325410] %v1781_v61 }

</bundles_post_ra>
